<compile_context>
chip_gen: v6e
topology: v6e:2x2x1
jax: 0.10.0
libtpu: 0.0.40
codegen_flags: <defaults>
</compile_context>

<pallas_src>
import jax
import jax.numpy as jnp
from jax import lax
from jax.experimental import pallas as pl
from jax.experimental.pallas import tpu as pltpu

# --- small synthetic sizes (stand-ins for MobileNetV3-small dims) ---
N = 2          # batch
CIN = 3        # input channels (RGB)
H = W = 16     # spatial
C1 = 16        # first conv output channels
CF = 32        # feature dim after avgpool   (stand-in for 576)
CC = 64        # classifier[0] output dim    (stand-in for 1024)
PH = 64        # projection head hidden dim
PD = 32        # projection head output dim

KH = KW = 3
STRIDE = 2
PAD = 1
HP = H + 2 * PAD              # 18 (padded height)
WP = W + 2 * PAD              # 18 (padded width)
OH = (HP - KH) // STRIDE + 1  # 8
OW = (WP - KW) // STRIDE + 1  # 8
HH = HP // 2                  # 9 (phase-grid height)
WH = WP // 2                  # 9 (phase-grid width)


def _hardswish(x):
    return x * jnp.clip(x + 3.0, 0.0, 6.0) * (1.0 / 6.0)


# ------------------------------------------------------------------
# Fused kernel: per-image forward pass, everything VMEM-resident
# ------------------------------------------------------------------
def combined_embedder_kernel(x_ref, w1_ref, b1_ref, w2_ref, b2_ref,
                             wc_ref, bc_ref, w1f_ref, w1c_ref, bp1_ref,
                             wp2_ref, bp2_ref, f_ref, c_ref, z_ref):
    # ---- conv1: 3x3 stride-2, as 9 shifted-window matmuls (in-kernel im2col)
    # x_ref block: (1, 4*HH, WH, CIN) where row index = (p*2+q)*HH + i and
    # x[(p*2+q)*HH+i, j, c] == x_padded[2*i+p, 2*j+q, c].
    acc = jnp.zeros((OH * OW, C1), jnp.float32)
    for di in range(KH):
        for dj in range(KW):
            p, ho = di % 2, di // 2
            q, wo = dj % 2, dj // 2
            base = (p * 2 + q) * HH + ho
            win = x_ref[0, base:base + OH, wo:wo + OW, :]        # (OH, OW, CIN)
            lhs = win.reshape(OH * OW, CIN).astype(jnp.bfloat16)
            w_t = w1_ref[di * KW + dj]                           # (CIN, C1) bf16
            acc = acc + jnp.dot(lhs, w_t, preferred_element_type=jnp.float32)
    y1 = _hardswish(acc + b1_ref[...])                           # (OH*OW, C1) f32

    # ---- conv2: 1x1 + hardswish ----
    y2 = jnp.dot(y1.astype(jnp.bfloat16), w2_ref[...],
                 preferred_element_type=jnp.float32) + b2_ref[...]
    y2 = _hardswish(y2)                                          # (OH*OW, CF) f32

    # ---- AdaptiveAvgPool2d(1) + flatten(1) ----
    f = jnp.mean(y2, axis=0, keepdims=True)                      # (1, CF) f32
    fb = f.astype(jnp.bfloat16)

    # ---- classifier0: Linear(CF -> CC), no activation ----
    c = jnp.dot(fb, wc_ref[...],
                preferred_element_type=jnp.float32) + bc_ref[...]  # (1, CC)

    # ---- proj: Linear(CF+CC -> PH) -> ReLU -> Linear(PH -> PD)
    # concat @ W1 computed as split matmul f @ W1[:CF] + c @ W1[CF:]
    h = (jnp.dot(fb, w1f_ref[...], preferred_element_type=jnp.float32)
         + jnp.dot(c.astype(jnp.bfloat16), w1c_ref[...],
                   preferred_element_type=jnp.float32)
         + bp1_ref[...])
    h = jnp.maximum(h, 0.0)
    z = jnp.dot(h.astype(jnp.bfloat16), wp2_ref[...],
                preferred_element_type=jnp.float32) + bp2_ref[...]  # (1, PD)

    # F.normalize(z, dim=1): z / max(||z||, 1e-12) == z * rsqrt(max(sum z^2, 1e-24))
    zn = z * lax.rsqrt(jnp.maximum(jnp.sum(z * z, axis=1, keepdims=True), 1e-24))

    # lane-dense outputs (combined = cat([f, c]) is done in the wrapper)
    f_ref[0] = f
    c_ref[0] = c
    z_ref[0] = zn


# ------------------------------------------------------------------
# Wrapper-side layout plumbing (free): pad + space-to-depth phase split
# ------------------------------------------------------------------
def _phase_split(x_nhwc):
    xp = jnp.pad(x_nhwc, ((0, 0), (PAD, PAD), (PAD, PAD), (0, 0)))
    n = xp.shape[0]
    xr = xp.reshape(n, HH, 2, WH, 2, CIN)          # [n, i, p, j, q, c]
    xr = jnp.transpose(xr, (0, 2, 4, 1, 3, 5))     # [n, p, q, i, j, c]
    return xr.reshape(n, 4 * HH, WH, CIN)          # [n, (p*2+q)*HH + i, j, c]


def _full_spec(arr):
    nd = arr.ndim
    return pl.BlockSpec(arr.shape, lambda b, nd=nd: (0,) * nd)


def combined_embedder_forward(x_nchw, params):
    # NCHW (PyTorch) -> NHWC (channels on TPU lanes)
    x = jnp.transpose(x_nchw, (0, 2, 3, 1)).astype(jnp.float32)
    x_ph = _phase_split(x)
    n = x_ph.shape[0]

    w1 = params["w_conv1"]; b1 = params["b_conv1"].reshape(1, C1)
    w2 = params["w_conv2"]; b2 = params["b_conv2"].reshape(1, CF)
    wc = params["w_c"];     bc = params["b_c"].reshape(1, CC)
    wp1 = params["w_p1"]
    w1f, w1c = wp1[:CF], wp1[CF:]
    bp1 = params["b_p1"].reshape(1, PH)
    wp2 = params["w_p2"]; bp2 = params["b_p2"].reshape(1, PD)

    weights = (w1, b1, w2, b2, wc, bc, w1f, w1c, bp1, wp2, bp2)

    in_specs = [pl.BlockSpec((1, 4 * HH, WH, CIN), lambda b: (b, 0, 0, 0))]
    in_specs += [_full_spec(w) for w in weights]

    out_specs = (pl.BlockSpec((1, 1, CF), lambda b: (b, 0, 0)),
                 pl.BlockSpec((1, 1, CC), lambda b: (b, 0, 0)),
                 pl.BlockSpec((1, 1, PD), lambda b: (b, 0, 0)))
    out_shape = (jax.ShapeDtypeStruct((n, 1, CF), jnp.float32),
                 jax.ShapeDtypeStruct((n, 1, CC), jnp.float32),
                 jax.ShapeDtypeStruct((n, 1, PD), jnp.float32))

    f_out, c_out, z_out = pl.pallas_call(
        combined_embedder_kernel,
        out_shape=out_shape,
        grid_spec=pltpu.PrefetchScalarGridSpec(
            num_scalar_prefetch=0,
            grid=(n,),
            in_specs=in_specs,
            out_specs=out_specs),
        compiler_params=pltpu.CompilerParams(
            dimension_semantics=("parallel",)),
    )(x_ph, *weights)

    f = f_out[:, 0, :]
    c = c_out[:, 0, :]
    combined = jnp.concatenate([f, c], axis=1)     # (N, CF + CC)
    return combined, z_out[:, 0, :]


def init_params(key):
    ks = jax.random.split(key, 10)
    s = 0.1

    def wgt(k, shape):  # matmul weights stored in bf16 (MXU-native)
        return (s * jax.random.normal(k, shape, jnp.float32)).astype(jnp.bfloat16)

    def bias(k, shape):
        return s * jax.random.normal(k, shape, jnp.float32)

    return {
        # conv1 weight layout is (kh*kw, cin, cout) with tap index kh_i*3+kw_j;
        # real PyTorch conv weights (cout, cin, kh, kw) must be permuted
        # (2, 3, 1, 0) and reshaped to (9, cin, cout) before loading.
        "w_conv1": wgt(ks[0], (KH * KW, CIN, C1)),
        "b_conv1": bias(ks[1], (C1,)),
        "w_conv2": wgt(ks[2], (C1, CF)),
        "b_conv2": bias(ks[3], (CF,)),
        "w_c":     wgt(ks[4], (CF, CC)),
        "b_c":     bias(ks[5], (CC,)),
        "w_p1":    wgt(ks[6], (CF + CC, PH)),
        "b_p1":    bias(ks[7], (PH,)),
        "w_p2":    wgt(ks[8], (PH, PD)),
        "b_p2":    bias(ks[9], (PD,)),
    }


if __name__ == "__main__":
    key = jax.random.PRNGKey(0)
    kx, kp = jax.random.split(key)
    x = jax.random.normal(kx, (N, CIN, H, W), jnp.float32)   # NCHW, like PyTorch
    params = init_params(kp)

    fwd = jax.jit(lambda xx: combined_embedder_forward(xx, params))
    combined, z = fwd(x)
    jax.block_until_ready((combined, z))

    assert combined.shape == (N, CF + CC)
    assert z.shape == (N, PD)
    assert bool(jnp.all(jnp.isfinite(combined))) and bool(jnp.all(jnp.isfinite(z)))
    # z rows are L2-normalized
    assert bool(jnp.allclose(jnp.linalg.norm(z, axis=1), 1.0, atol=1e-3))
    print("KERNEL_OK")
</pallas_src>

<mosaic_0001>
module attributes {stable_mosaic.version = 11 : i64} {
  func.func @combined_embedder_kernel(%arg0: i32, %arg1: memref<1x36x9x3xf32, #tpu.memory_space<vmem>>, %arg2: memref<9x3x16xbf16, #tpu.memory_space<vmem>>, %arg3: memref<1x16xf32, #tpu.memory_space<vmem>>, %arg4: memref<16x32xbf16, #tpu.memory_space<vmem>>, %arg5: memref<1x32xf32, #tpu.memory_space<vmem>>, %arg6: memref<32x64xbf16, #tpu.memory_space<vmem>>, %arg7: memref<1x64xf32, #tpu.memory_space<vmem>>, %arg8: memref<32x64xbf16, #tpu.memory_space<vmem>>, %arg9: memref<64x64xbf16, #tpu.memory_space<vmem>>, %arg10: memref<1x64xf32, #tpu.memory_space<vmem>>, %arg11: memref<64x32xbf16, #tpu.memory_space<vmem>>, %arg12: memref<1x32xf32, #tpu.memory_space<vmem>>, %arg13: memref<1x1x32xf32, #tpu.memory_space<vmem>>, %arg14: memref<1x1x64xf32, #tpu.memory_space<vmem>>, %arg15: memref<1x1x32xf32, #tpu.memory_space<vmem>>) attributes {dimension_semantics = [#tpu.dimension_semantics<parallel>], iteration_bounds = array<i64: 2>, scalar_prefetch = 0 : i64, scratch_operands = 0 : i64, tpu.core_type = #tpu.core_type<tc>, window_params = [{transform_indices = @transform_0, window_bounds = array<i64: 1, 36, 9, 3>}, {pipeline_mode = #tpu.pipeline_mode<synchronous>, transform_indices = @transform_1, window_bounds = array<i64: 9, 3, 16>}, {pipeline_mode = #tpu.pipeline_mode<synchronous>, transform_indices = @transform_2, window_bounds = array<i64: 1, 16>}, {pipeline_mode = #tpu.pipeline_mode<synchronous>, transform_indices = @transform_3, window_bounds = array<i64: 16, 32>}, {pipeline_mode = #tpu.pipeline_mode<synchronous>, transform_indices = @transform_4, window_bounds = array<i64: 1, 32>}, {pipeline_mode = #tpu.pipeline_mode<synchronous>, transform_indices = @transform_5, window_bounds = array<i64: 32, 64>}, {pipeline_mode = #tpu.pipeline_mode<synchronous>, transform_indices = @transform_6, window_bounds = array<i64: 1, 64>}, {pipeline_mode = #tpu.pipeline_mode<synchronous>, transform_indices = @transform_7, window_bounds = array<i64: 32, 64>}, {pipeline_mode = #tpu.pipeline_mode<synchronous>, transform_indices = @transform_8, window_bounds = array<i64: 64, 64>}, {pipeline_mode = #tpu.pipeline_mode<synchronous>, transform_indices = @transform_9, window_bounds = array<i64: 1, 64>}, {pipeline_mode = #tpu.pipeline_mode<synchronous>, transform_indices = @transform_10, window_bounds = array<i64: 64, 32>}, {pipeline_mode = #tpu.pipeline_mode<synchronous>, transform_indices = @transform_11, window_bounds = array<i64: 1, 32>}, {transform_indices = @transform_12, window_bounds = array<i64: 1, 1, 32>}, {transform_indices = @transform_13, window_bounds = array<i64: 1, 1, 64>}, {transform_indices = @transform_14, window_bounds = array<i64: 1, 1, 32>}]} {
    %cst = arith.constant 0.000000e+00 : f32
    %0 = vector.broadcast %cst : f32 to vector<64x16xf32>
    %c0 = arith.constant 0 : index
    %c0_0 = arith.constant 0 : index
    %c0_1 = arith.constant 0 : index
    %c0_2 = arith.constant 0 : index
    %1 = vector.load %arg1[%c0, %c0_0, %c0_1, %c0_2] : memref<1x36x9x3xf32, #tpu.memory_space<vmem>>, vector<1x8x8x3xf32>
    %2 = vector.shape_cast %1 : vector<1x8x8x3xf32> to vector<8x8x3xf32>
    %3 = vector.shape_cast %2 : vector<8x8x3xf32> to vector<64x3xf32>
    %4 = arith.truncf %3 : vector<64x3xf32> to vector<64x3xbf16>
    %c0_3 = arith.constant 0 : index
    %c0_4 = arith.constant 0 : index
    %c0_5 = arith.constant 0 : index
    %5 = vector.load %arg2[%c0_3, %c0_4, %c0_5] : memref<9x3x16xbf16, #tpu.memory_space<vmem>>, vector<1x3x16xbf16>
    %6 = vector.shape_cast %5 : vector<1x3x16xbf16> to vector<3x16xbf16>
    %cst_6 = arith.constant dense<0.000000e+00> : vector<64x16xf32>
    %7 = tpu.matmul %4, %6, %cst_6 {dimension_numbers = #tpu.dot_dimension_numbers<[1], [0], [0], [1], [0, 0, 1, 1], [], []>} : vector<64x3xbf16>, vector<3x16xbf16>, vector<64x16xf32> -> vector<64x16xf32>
    %8 = arith.addf %0, %7 : vector<64x16xf32>
    %c0_7 = arith.constant 0 : index
    %c9 = arith.constant 9 : index
    %c0_8 = arith.constant 0 : index
    %c0_9 = arith.constant 0 : index
    %9 = vector.load %arg1[%c0_7, %c9, %c0_8, %c0_9] : memref<1x36x9x3xf32, #tpu.memory_space<vmem>>, vector<1x8x8x3xf32>
    %10 = vector.shape_cast %9 : vector<1x8x8x3xf32> to vector<8x8x3xf32>
    %11 = vector.shape_cast %10 : vector<8x8x3xf32> to vector<64x3xf32>
    %12 = arith.truncf %11 : vector<64x3xf32> to vector<64x3xbf16>
    %c1 = arith.constant 1 : index
    %c0_10 = arith.constant 0 : index
    %c0_11 = arith.constant 0 : index
    %13 = vector.load %arg2[%c1, %c0_10, %c0_11] : memref<9x3x16xbf16, #tpu.memory_space<vmem>>, vector<1x3x16xbf16>
    %14 = vector.shape_cast %13 : vector<1x3x16xbf16> to vector<3x16xbf16>
    %cst_12 = arith.constant dense<0.000000e+00> : vector<64x16xf32>
    %15 = tpu.matmul %12, %14, %cst_12 {dimension_numbers = #tpu.dot_dimension_numbers<[1], [0], [0], [1], [0, 0, 1, 1], [], []>} : vector<64x3xbf16>, vector<3x16xbf16>, vector<64x16xf32> -> vector<64x16xf32>
    %16 = arith.addf %8, %15 : vector<64x16xf32>
    %c0_13 = arith.constant 0 : index
    %c0_14 = arith.constant 0 : index
    %c1_15 = arith.constant 1 : index
    %c0_16 = arith.constant 0 : index
    %17 = vector.load %arg1[%c0_13, %c0_14, %c1_15, %c0_16] : memref<1x36x9x3xf32, #tpu.memory_space<vmem>>, vector<1x8x8x3xf32>
    %18 = vector.shape_cast %17 : vector<1x8x8x3xf32> to vector<8x8x3xf32>
    %19 = vector.shape_cast %18 : vector<8x8x3xf32> to vector<64x3xf32>
    %20 = arith.truncf %19 : vector<64x3xf32> to vector<64x3xbf16>
    %c2 = arith.constant 2 : index
    %c0_17 = arith.constant 0 : index
    %c0_18 = arith.constant 0 : index
    %21 = vector.load %arg2[%c2, %c0_17, %c0_18] : memref<9x3x16xbf16, #tpu.memory_space<vmem>>, vector<1x3x16xbf16>
    %22 = vector.shape_cast %21 : vector<1x3x16xbf16> to vector<3x16xbf16>
    %cst_19 = arith.constant dense<0.000000e+00> : vector<64x16xf32>
    %23 = tpu.matmul %20, %22, %cst_19 {dimension_numbers = #tpu.dot_dimension_numbers<[1], [0], [0], [1], [0, 0, 1, 1], [], []>} : vector<64x3xbf16>, vector<3x16xbf16>, vector<64x16xf32> -> vector<64x16xf32>
    %24 = arith.addf %16, %23 : vector<64x16xf32>
    %c0_20 = arith.constant 0 : index
    %c18 = arith.constant 18 : index
    %c0_21 = arith.constant 0 : index
    %c0_22 = arith.constant 0 : index
    %25 = vector.load %arg1[%c0_20, %c18, %c0_21, %c0_22] : memref<1x36x9x3xf32, #tpu.memory_space<vmem>>, vector<1x8x8x3xf32>
    %26 = vector.shape_cast %25 : vector<1x8x8x3xf32> to vector<8x8x3xf32>
    %27 = vector.shape_cast %26 : vector<8x8x3xf32> to vector<64x3xf32>
    %28 = arith.truncf %27 : vector<64x3xf32> to vector<64x3xbf16>
    %c3 = arith.constant 3 : index
    %c0_23 = arith.constant 0 : index
    %c0_24 = arith.constant 0 : index
    %29 = vector.load %arg2[%c3, %c0_23, %c0_24] : memref<9x3x16xbf16, #tpu.memory_space<vmem>>, vector<1x3x16xbf16>
    %30 = vector.shape_cast %29 : vector<1x3x16xbf16> to vector<3x16xbf16>
    %cst_25 = arith.constant dense<0.000000e+00> : vector<64x16xf32>
    %31 = tpu.matmul %28, %30, %cst_25 {dimension_numbers = #tpu.dot_dimension_numbers<[1], [0], [0], [1], [0, 0, 1, 1], [], []>} : vector<64x3xbf16>, vector<3x16xbf16>, vector<64x16xf32> -> vector<64x16xf32>
    %32 = arith.addf %24, %31 : vector<64x16xf32>
    %c0_26 = arith.constant 0 : index
    %c27 = arith.constant 27 : index
    %c0_27 = arith.constant 0 : index
    %c0_28 = arith.constant 0 : index
    %33 = vector.load %arg1[%c0_26, %c27, %c0_27, %c0_28] : memref<1x36x9x3xf32, #tpu.memory_space<vmem>>, vector<1x8x8x3xf32>
    %34 = vector.shape_cast %33 : vector<1x8x8x3xf32> to vector<8x8x3xf32>
    %35 = vector.shape_cast %34 : vector<8x8x3xf32> to vector<64x3xf32>
    %36 = arith.truncf %35 : vector<64x3xf32> to vector<64x3xbf16>
    %c4 = arith.constant 4 : index
    %c0_29 = arith.constant 0 : index
    %c0_30 = arith.constant 0 : index
    %37 = vector.load %arg2[%c4, %c0_29, %c0_30] : memref<9x3x16xbf16, #tpu.memory_space<vmem>>, vector<1x3x16xbf16>
    %38 = vector.shape_cast %37 : vector<1x3x16xbf16> to vector<3x16xbf16>
    %cst_31 = arith.constant dense<0.000000e+00> : vector<64x16xf32>
    %39 = tpu.matmul %36, %38, %cst_31 {dimension_numbers = #tpu.dot_dimension_numbers<[1], [0], [0], [1], [0, 0, 1, 1], [], []>} : vector<64x3xbf16>, vector<3x16xbf16>, vector<64x16xf32> -> vector<64x16xf32>
    %40 = arith.addf %32, %39 : vector<64x16xf32>
    %c0_32 = arith.constant 0 : index
    %c18_33 = arith.constant 18 : index
    %c1_34 = arith.constant 1 : index
    %c0_35 = arith.constant 0 : index
    %41 = vector.load %arg1[%c0_32, %c18_33, %c1_34, %c0_35] : memref<1x36x9x3xf32, #tpu.memory_space<vmem>>, vector<1x8x8x3xf32>
    %42 = vector.shape_cast %41 : vector<1x8x8x3xf32> to vector<8x8x3xf32>
    %43 = vector.shape_cast %42 : vector<8x8x3xf32> to vector<64x3xf32>
    %44 = arith.truncf %43 : vector<64x3xf32> to vector<64x3xbf16>
    %c5 = arith.constant 5 : index
    %c0_36 = arith.constant 0 : index
    %c0_37 = arith.constant 0 : index
    %45 = vector.load %arg2[%c5, %c0_36, %c0_37] : memref<9x3x16xbf16, #tpu.memory_space<vmem>>, vector<1x3x16xbf16>
    %46 = vector.shape_cast %45 : vector<1x3x16xbf16> to vector<3x16xbf16>
    %cst_38 = arith.constant dense<0.000000e+00> : vector<64x16xf32>
    %47 = tpu.matmul %44, %46, %cst_38 {dimension_numbers = #tpu.dot_dimension_numbers<[1], [0], [0], [1], [0, 0, 1, 1], [], []>} : vector<64x3xbf16>, vector<3x16xbf16>, vector<64x16xf32> -> vector<64x16xf32>
    %48 = arith.addf %40, %47 : vector<64x16xf32>
    %c0_39 = arith.constant 0 : index
    %c1_40 = arith.constant 1 : index
    %c0_41 = arith.constant 0 : index
    %c0_42 = arith.constant 0 : index
    %49 = vector.load %arg1[%c0_39, %c1_40, %c0_41, %c0_42] : memref<1x36x9x3xf32, #tpu.memory_space<vmem>>, vector<1x8x8x3xf32>
    %50 = vector.shape_cast %49 : vector<1x8x8x3xf32> to vector<8x8x3xf32>
    %51 = vector.shape_cast %50 : vector<8x8x3xf32> to vector<64x3xf32>
    %52 = arith.truncf %51 : vector<64x3xf32> to vector<64x3xbf16>
    %c6 = arith.constant 6 : index
    %c0_43 = arith.constant 0 : index
    %c0_44 = arith.constant 0 : index
    %53 = vector.load %arg2[%c6, %c0_43, %c0_44] : memref<9x3x16xbf16, #tpu.memory_space<vmem>>, vector<1x3x16xbf16>
    %54 = vector.shape_cast %53 : vector<1x3x16xbf16> to vector<3x16xbf16>
    %cst_45 = arith.constant dense<0.000000e+00> : vector<64x16xf32>
    %55 = tpu.matmul %52, %54, %cst_45 {dimension_numbers = #tpu.dot_dimension_numbers<[1], [0], [0], [1], [0, 0, 1, 1], [], []>} : vector<64x3xbf16>, vector<3x16xbf16>, vector<64x16xf32> -> vector<64x16xf32>
    %56 = arith.addf %48, %55 : vector<64x16xf32>
    %c0_46 = arith.constant 0 : index
    %c10 = arith.constant 10 : index
    %c0_47 = arith.constant 0 : index
    %c0_48 = arith.constant 0 : index
    %57 = vector.load %arg1[%c0_46, %c10, %c0_47, %c0_48] : memref<1x36x9x3xf32, #tpu.memory_space<vmem>>, vector<1x8x8x3xf32>
    %58 = vector.shape_cast %57 : vector<1x8x8x3xf32> to vector<8x8x3xf32>
    %59 = vector.shape_cast %58 : vector<8x8x3xf32> to vector<64x3xf32>
    %60 = arith.truncf %59 : vector<64x3xf32> to vector<64x3xbf16>
    %c7 = arith.constant 7 : index
    %c0_49 = arith.constant 0 : index
    %c0_50 = arith.constant 0 : index
    %61 = vector.load %arg2[%c7, %c0_49, %c0_50] : memref<9x3x16xbf16, #tpu.memory_space<vmem>>, vector<1x3x16xbf16>
    %62 = vector.shape_cast %61 : vector<1x3x16xbf16> to vector<3x16xbf16>
    %cst_51 = arith.constant dense<0.000000e+00> : vector<64x16xf32>
    %63 = tpu.matmul %60, %62, %cst_51 {dimension_numbers = #tpu.dot_dimension_numbers<[1], [0], [0], [1], [0, 0, 1, 1], [], []>} : vector<64x3xbf16>, vector<3x16xbf16>, vector<64x16xf32> -> vector<64x16xf32>
    %64 = arith.addf %56, %63 : vector<64x16xf32>
    %c0_52 = arith.constant 0 : index
    %c1_53 = arith.constant 1 : index
    %c1_54 = arith.constant 1 : index
    %c0_55 = arith.constant 0 : index
    %65 = vector.load %arg1[%c0_52, %c1_53, %c1_54, %c0_55] : memref<1x36x9x3xf32, #tpu.memory_space<vmem>>, vector<1x8x8x3xf32>
    %66 = vector.shape_cast %65 : vector<1x8x8x3xf32> to vector<8x8x3xf32>
    %67 = vector.shape_cast %66 : vector<8x8x3xf32> to vector<64x3xf32>
    %68 = arith.truncf %67 : vector<64x3xf32> to vector<64x3xbf16>
    %c8 = arith.constant 8 : index
    %c0_56 = arith.constant 0 : index
    %c0_57 = arith.constant 0 : index
    %69 = vector.load %arg2[%c8, %c0_56, %c0_57] : memref<9x3x16xbf16, #tpu.memory_space<vmem>>, vector<1x3x16xbf16>
    %70 = vector.shape_cast %69 : vector<1x3x16xbf16> to vector<3x16xbf16>
    %cst_58 = arith.constant dense<0.000000e+00> : vector<64x16xf32>
    %71 = tpu.matmul %68, %70, %cst_58 {dimension_numbers = #tpu.dot_dimension_numbers<[1], [0], [0], [1], [0, 0, 1, 1], [], []>} : vector<64x3xbf16>, vector<3x16xbf16>, vector<64x16xf32> -> vector<64x16xf32>
    %72 = arith.addf %64, %71 : vector<64x16xf32>
    %c0_59 = arith.constant 0 : index
    %c0_60 = arith.constant 0 : index
    %73 = vector.load %arg3[%c0_59, %c0_60] : memref<1x16xf32, #tpu.memory_space<vmem>>, vector<1x16xf32>
    %74 = vector.broadcast %73 : vector<1x16xf32> to vector<64x16xf32>
    %75 = arith.addf %72, %74 : vector<64x16xf32>
    %cst_61 = arith.constant 3.000000e+00 : f32
    %76 = vector.broadcast %cst_61 : f32 to vector<64x16xf32>
    %77 = arith.addf %75, %76 : vector<64x16xf32>
    %cst_62 = arith.constant 0.000000e+00 : f32
    %cst_63 = arith.constant 6.000000e+00 : f32
    %78 = vector.broadcast %cst_62 : f32 to vector<64x16xf32>
    %79 = arith.maximumf %78, %77 : vector<64x16xf32>
    %80 = vector.broadcast %cst_63 : f32 to vector<64x16xf32>
    %81 = arith.minimumf %80, %79 : vector<64x16xf32>
    %82 = arith.mulf %75, %81 : vector<64x16xf32>
    %cst_64 = arith.constant 0.166666672 : f32
    %83 = vector.broadcast %cst_64 : f32 to vector<64x16xf32>
    %84 = arith.mulf %82, %83 : vector<64x16xf32>
    %85 = arith.truncf %84 : vector<64x16xf32> to vector<64x16xbf16>
    %c0_65 = arith.constant 0 : index
    %c0_66 = arith.constant 0 : index
    %86 = vector.load %arg4[%c0_65, %c0_66] : memref<16x32xbf16, #tpu.memory_space<vmem>>, vector<16x32xbf16>
    %cst_67 = arith.constant dense<0.000000e+00> : vector<64x32xf32>
    %87 = tpu.matmul %85, %86, %cst_67 {dimension_numbers = #tpu.dot_dimension_numbers<[1], [0], [0], [1], [0, 0, 1, 1], [], []>} : vector<64x16xbf16>, vector<16x32xbf16>, vector<64x32xf32> -> vector<64x32xf32>
    %c0_68 = arith.constant 0 : index
    %c0_69 = arith.constant 0 : index
    %88 = vector.load %arg5[%c0_68, %c0_69] : memref<1x32xf32, #tpu.memory_space<vmem>>, vector<1x32xf32>
    %89 = vector.broadcast %88 : vector<1x32xf32> to vector<64x32xf32>
    %90 = arith.addf %87, %89 : vector<64x32xf32>
    %cst_70 = arith.constant 3.000000e+00 : f32
    %91 = vector.broadcast %cst_70 : f32 to vector<64x32xf32>
    %92 = arith.addf %90, %91 : vector<64x32xf32>
    %cst_71 = arith.constant 0.000000e+00 : f32
    %cst_72 = arith.constant 6.000000e+00 : f32
    %93 = vector.broadcast %cst_71 : f32 to vector<64x32xf32>
    %94 = arith.maximumf %93, %92 : vector<64x32xf32>
    %95 = vector.broadcast %cst_72 : f32 to vector<64x32xf32>
    %96 = arith.minimumf %95, %94 : vector<64x32xf32>
    %97 = arith.mulf %90, %96 : vector<64x32xf32>
    %cst_73 = arith.constant 0.166666672 : f32
    %98 = vector.broadcast %cst_73 : f32 to vector<64x32xf32>
    %99 = arith.mulf %97, %98 : vector<64x32xf32>
    %cst_74 = arith.constant dense<0.000000e+00> : vector<32xf32>
    %100 = vector.multi_reduction <add>, %99, %cst_74 [0] : vector<64x32xf32> to vector<32xf32>
    %101 = vector.shape_cast %100 : vector<32xf32> to vector<1x32xf32>
    %cst_75 = arith.constant 6.400000e+01 : f32
    %102 = vector.broadcast %cst_75 : f32 to vector<1x32xf32>
    %103 = arith.divf %101, %102 : vector<1x32xf32>
    %104 = arith.truncf %103 : vector<1x32xf32> to vector<1x32xbf16>
    %c0_76 = arith.constant 0 : index
    %c0_77 = arith.constant 0 : index
    %105 = vector.load %arg6[%c0_76, %c0_77] : memref<32x64xbf16, #tpu.memory_space<vmem>>, vector<32x64xbf16>
    %cst_78 = arith.constant dense<0.000000e+00> : vector<1x64xf32>
    %106 = tpu.matmul %104, %105, %cst_78 {dimension_numbers = #tpu.dot_dimension_numbers<[1], [0], [0], [1], [0, 0, 1, 1], [], []>} : vector<1x32xbf16>, vector<32x64xbf16>, vector<1x64xf32> -> vector<1x64xf32>
    %c0_79 = arith.constant 0 : index
    %c0_80 = arith.constant 0 : index
    %107 = vector.load %arg7[%c0_79, %c0_80] : memref<1x64xf32, #tpu.memory_space<vmem>>, vector<1x64xf32>
    %108 = arith.addf %106, %107 : vector<1x64xf32>
    %c0_81 = arith.constant 0 : index
    %c0_82 = arith.constant 0 : index
    %109 = vector.load %arg8[%c0_81, %c0_82] : memref<32x64xbf16, #tpu.memory_space<vmem>>, vector<32x64xbf16>
    %cst_83 = arith.constant dense<0.000000e+00> : vector<1x64xf32>
    %110 = tpu.matmul %104, %109, %cst_83 {dimension_numbers = #tpu.dot_dimension_numbers<[1], [0], [0], [1], [0, 0, 1, 1], [], []>} : vector<1x32xbf16>, vector<32x64xbf16>, vector<1x64xf32> -> vector<1x64xf32>
    %111 = arith.truncf %108 : vector<1x64xf32> to vector<1x64xbf16>
    %c0_84 = arith.constant 0 : index
    %c0_85 = arith.constant 0 : index
    %112 = vector.load %arg9[%c0_84, %c0_85] : memref<64x64xbf16, #tpu.memory_space<vmem>>, vector<64x64xbf16>
    %cst_86 = arith.constant dense<0.000000e+00> : vector<1x64xf32>
    %113 = tpu.matmul %111, %112, %cst_86 {dimension_numbers = #tpu.dot_dimension_numbers<[1], [0], [0], [1], [0, 0, 1, 1], [], []>} : vector<1x64xbf16>, vector<64x64xbf16>, vector<1x64xf32> -> vector<1x64xf32>
    %114 = arith.addf %110, %113 : vector<1x64xf32>
    %c0_87 = arith.constant 0 : index
    %c0_88 = arith.constant 0 : index
    %115 = vector.load %arg10[%c0_87, %c0_88] : memref<1x64xf32, #tpu.memory_space<vmem>>, vector<1x64xf32>
    %116 = arith.addf %114, %115 : vector<1x64xf32>
    %cst_89 = arith.constant 0.000000e+00 : f32
    %117 = vector.broadcast %cst_89 : f32 to vector<1x64xf32>
    %118 = arith.maximumf %116, %117 : vector<1x64xf32>
    %119 = arith.truncf %118 : vector<1x64xf32> to vector<1x64xbf16>
    %c0_90 = arith.constant 0 : index
    %c0_91 = arith.constant 0 : index
    %120 = vector.load %arg11[%c0_90, %c0_91] : memref<64x32xbf16, #tpu.memory_space<vmem>>, vector<64x32xbf16>
    %cst_92 = arith.constant dense<0.000000e+00> : vector<1x32xf32>
    %121 = tpu.matmul %119, %120, %cst_92 {dimension_numbers = #tpu.dot_dimension_numbers<[1], [0], [0], [1], [0, 0, 1, 1], [], []>} : vector<1x64xbf16>, vector<64x32xbf16>, vector<1x32xf32> -> vector<1x32xf32>
    %c0_93 = arith.constant 0 : index
    %c0_94 = arith.constant 0 : index
    %122 = vector.load %arg12[%c0_93, %c0_94] : memref<1x32xf32, #tpu.memory_space<vmem>>, vector<1x32xf32>
    %123 = arith.addf %121, %122 : vector<1x32xf32>
    %124 = arith.mulf %123, %123 : vector<1x32xf32>
    %cst_95 = arith.constant dense<0.000000e+00> : vector<1xf32>
    %125 = vector.multi_reduction <add>, %124, %cst_95 [1] : vector<1x32xf32> to vector<1xf32>
    %126 = vector.shape_cast %125 : vector<1xf32> to vector<1x1xf32>
    %cst_96 = arith.constant 1.000000e-24 : f32
    %127 = vector.broadcast %cst_96 : f32 to vector<1x1xf32>
    %128 = arith.maximumf %126, %127 : vector<1x1xf32>
    %129 = math.rsqrt %128 : vector<1x1xf32>
    %130 = vector.broadcast %129 : vector<1x1xf32> to vector<1x32xf32>
    %131 = arith.mulf %123, %130 : vector<1x32xf32>
    %c0_97 = arith.constant 0 : index
    %c0_98 = arith.constant 0 : index
    %c0_99 = arith.constant 0 : index
    %132 = vector.load %arg13[%c0_97, %c0_98, %c0_99] : memref<1x1x32xf32, #tpu.memory_space<vmem>>, vector<1x1x32xf32>
    %133 = vector.shape_cast %132 : vector<1x1x32xf32> to vector<1x32xf32>
    %134 = vector.shape_cast %103 : vector<1x32xf32> to vector<1x1x32xf32>
    tpu.vector_store %arg13[%c0_97, %c0_98, %c0_99], %134 {strides = array<i32>} : memref<1x1x32xf32, #tpu.memory_space<vmem>>, vector<1x1x32xf32>,
    %c0_100 = arith.constant 0 : index
    %c0_101 = arith.constant 0 : index
    %c0_102 = arith.constant 0 : index
    %135 = vector.load %arg14[%c0_100, %c0_101, %c0_102] : memref<1x1x64xf32, #tpu.memory_space<vmem>>, vector<1x1x64xf32>
    %136 = vector.shape_cast %135 : vector<1x1x64xf32> to vector<1x64xf32>
    %137 = vector.shape_cast %108 : vector<1x64xf32> to vector<1x1x64xf32>
    tpu.vector_store %arg14[%c0_100, %c0_101, %c0_102], %137 {strides = array<i32>} : memref<1x1x64xf32, #tpu.memory_space<vmem>>, vector<1x1x64xf32>,
    %c0_103 = arith.constant 0 : index
    %c0_104 = arith.constant 0 : index
    %c0_105 = arith.constant 0 : index
    %138 = vector.load %arg15[%c0_103, %c0_104, %c0_105] : memref<1x1x32xf32, #tpu.memory_space<vmem>>, vector<1x1x32xf32>
    %139 = vector.shape_cast %138 : vector<1x1x32xf32> to vector<1x32xf32>
    %140 = vector.shape_cast %131 : vector<1x32xf32> to vector<1x1x32xf32>
    tpu.vector_store %arg15[%c0_103, %c0_104, %c0_105], %140 {strides = array<i32>} : memref<1x1x32xf32, #tpu.memory_space<vmem>>, vector<1x1x32xf32>,
    return
  }
  func.func @transform_0(%arg0: i32) -> (i32, i32, i32, i32) {
    %c0_i32 = arith.constant 0 : i32
    %c0_i32_0 = arith.constant 0 : i32
    %c0_i32_1 = arith.constant 0 : i32
    %c0_i32_2 = arith.constant 0 : i32
    return %arg0, %c0_i32, %c0_i32_0, %c0_i32_1 : i32, i32, i32, i32
  }
  func.func @transform_1(%arg0: i32) -> (i32, i32, i32) {
    %c0_i32 = arith.constant 0 : i32
    %c0_i32_0 = arith.constant 0 : i32
    %c0_i32_1 = arith.constant 0 : i32
    %c0_i32_2 = arith.constant 0 : i32
    return %c0_i32, %c0_i32_0, %c0_i32_1 : i32, i32, i32
  }
  func.func @transform_2(%arg0: i32) -> (i32, i32) {
    %c0_i32 = arith.constant 0 : i32
    %c0_i32_0 = arith.constant 0 : i32
    %c0_i32_1 = arith.constant 0 : i32
    return %c0_i32, %c0_i32_0 : i32, i32
  }
  func.func @transform_3(%arg0: i32) -> (i32, i32) {
    %c0_i32 = arith.constant 0 : i32
    %c0_i32_0 = arith.constant 0 : i32
    %c0_i32_1 = arith.constant 0 : i32
    return %c0_i32, %c0_i32_0 : i32, i32
  }
  func.func @transform_4(%arg0: i32) -> (i32, i32) {
    %c0_i32 = arith.constant 0 : i32
    %c0_i32_0 = arith.constant 0 : i32
    %c0_i32_1 = arith.constant 0 : i32
    return %c0_i32, %c0_i32_0 : i32, i32
  }
  func.func @transform_5(%arg0: i32) -> (i32, i32) {
    %c0_i32 = arith.constant 0 : i32
    %c0_i32_0 = arith.constant 0 : i32
    %c0_i32_1 = arith.constant 0 : i32
    return %c0_i32, %c0_i32_0 : i32, i32
  }
  func.func @transform_6(%arg0: i32) -> (i32, i32) {
    %c0_i32 = arith.constant 0 : i32
    %c0_i32_0 = arith.constant 0 : i32
    %c0_i32_1 = arith.constant 0 : i32
    return %c0_i32, %c0_i32_0 : i32, i32
  }
  func.func @transform_7(%arg0: i32) -> (i32, i32) {
    %c0_i32 = arith.constant 0 : i32
    %c0_i32_0 = arith.constant 0 : i32
    %c0_i32_1 = arith.constant 0 : i32
    return %c0_i32, %c0_i32_0 : i32, i32
  }
  func.func @transform_8(%arg0: i32) -> (i32, i32) {
    %c0_i32 = arith.constant 0 : i32
    %c0_i32_0 = arith.constant 0 : i32
    %c0_i32_1 = arith.constant 0 : i32
    return %c0_i32, %c0_i32_0 : i32, i32
  }
  func.func @transform_9(%arg0: i32) -> (i32, i32) {
    %c0_i32 = arith.constant 0 : i32
    %c0_i32_0 = arith.constant 0 : i32
    %c0_i32_1 = arith.constant 0 : i32
    return %c0_i32, %c0_i32_0 : i32, i32
  }
  func.func @transform_10(%arg0: i32) -> (i32, i32) {
    %c0_i32 = arith.constant 0 : i32
    %c0_i32_0 = arith.constant 0 : i32
    %c0_i32_1 = arith.constant 0 : i32
    return %c0_i32, %c0_i32_0 : i32, i32
  }
  func.func @transform_11(%arg0: i32) -> (i32, i32) {
    %c0_i32 = arith.constant 0 : i32
    %c0_i32_0 = arith.constant 0 : i32
    %c0_i32_1 = arith.constant 0 : i32
    return %c0_i32, %c0_i32_0 : i32, i32
  }
  func.func @transform_12(%arg0: i32) -> (i32, i32, i32) {
    %c0_i32 = arith.constant 0 : i32
    %c0_i32_0 = arith.constant 0 : i32
    %c0_i32_1 = arith.constant 0 : i32
    return %arg0, %c0_i32, %c0_i32_0 : i32, i32, i32
  }
  func.func @transform_13(%arg0: i32) -> (i32, i32, i32) {
    %c0_i32 = arith.constant 0 : i32
    %c0_i32_0 = arith.constant 0 : i32
    %c0_i32_1 = arith.constant 0 : i32
    return %arg0, %c0_i32, %c0_i32_0 : i32, i32, i32
  }
  func.func @transform_14(%arg0: i32) -> (i32, i32, i32) {
    %c0_i32 = arith.constant 0 : i32
    %c0_i32_0 = arith.constant 0 : i32
    %c0_i32_1 = arith.constant 0 : i32
    return %arg0, %c0_i32, %c0_i32_0 : i32, i32, i32
  }
}

</mosaic_0001>

<bundles_post_ra>
// kernel: _lambda_.1
= control target key start
LH: loop header
LB: loop body
LE: loop exit
PB: predicated region body
PF: predicated region fallthrough
CT: control target
= control target key end

     0   :  { %s2989_s0 = inlined_call_operand.vmem [shape: f32[2,36,9,3], index: 0, kind: input, shape index: {}]   ;;  %s2990_s1 = inlined_call_operand.vmem [shape: bf16[9,3,16], index: 1, kind: input, shape index: {}]   ;;  %s2991_s2 = inlined_call_operand.vmem [shape: f32[1,16], index: 2, kind: input, shape index: {}]   ;;  %s2992_s3 = inlined_call_operand.vmem [shape: bf16[16,32], index: 3, kind: input, shape index: {}]   ;;  %s2993_s4 = inlined_call_operand.vmem [shape: f32[1,32], index: 4, kind: input, shape index: {}]   ;;  %s2994_s5 = inlined_call_operand.vmem [shape: bf16[32,64], index: 5, kind: input, shape index: {}]   ;;  %s2995_s6 = inlined_call_operand.vmem [shape: f32[1,64], index: 6, kind: input, shape index: {}]   ;;  %s2996_s7 = inlined_call_operand.vmem [shape: bf16[32,64], index: 7, kind: input, shape index: {}]   ;;  %s2997_s8 = inlined_call_operand.vmem [shape: bf16[64,64], index: 8, kind: input, shape index: {}]   ;;  %s2998_s9 = inlined_call_operand.vmem [shape: f32[1,64], index: 9, kind: input, shape index: {}]   ;;  %s2999_s10 = inlined_call_operand.vmem [shape: bf16[64,32], index: 10, kind: input, shape index: {}]   ;;  %s3000_s11 = inlined_call_operand.vmem [shape: f32[1,32], index: 11, kind: input, shape index: {}]   ;;  %s3001_s12 = inlined_call_operand.vmem [shape: f32[2,1,32], index: 12, kind: output, shape index: {0}]   ;;  %s3002_s13 = inlined_call_operand.vmem [shape: f32[2,1,64], index: 13, kind: output, shape index: {1}]   ;;  %s3003_s14 = inlined_call_operand.hbm [shape: f32[2,1,32], index: 14, kind: output, shape index: {2}]  }
   0x1   :  { %3005 = sst [smem:[#allocation9_spill]] %s2989_s0 }
   0x2   :  { %3006 = sst [smem:[#allocation10_spill]] %s2990_s1 }
   0x3   :  { %3007 = sst [smem:[#allocation11_spill]] %s2991_s2 }
   0x4   :  { %20 = vsyncpa [#allocation3], 0 }
   0x5   :  { %22 = vsyncpa [#allocation3 + $0x1], 0  ;;  %s2550_s29 = smov 0   ;;  %s2552_s30 = smov 0  }
   0x6   :  { %s2554_s15 = smov 0   ;;  %s2556_s16 = smov 0  }
   0x7 LB: > { %3008 = sst [smem:[#allocation5_spill]] %s2465_s15  ;;  %s2571_s17 = sadd.s32 4294967295, %s2469_s16   ;;  %s2469_s16 = sphi %s2556_s16, %s3023_s16   ;;  %s2465_s15 = sphi %s2554_s15, %s3020_s15   ;;  %s2461_s30 = sphi %s2552_s30, %s3022_s30   ;;  %s2457_s29 = sphi %s2550_s29, %s3021_s29  }
   0x8   : > { %s2014_s18 = sadd.s32 4294967294, %s2469_s16   ;;  %s2575_s19 = sadd.s32 1, %s2469_s16  }
   0x9   : > { %s344_s20 = sadd.s32 1, %s2465_s15  ;;  %s341_s21 = ssub.s32 %s2469_s16, %s2575_s19 }
   0xa   : > { %p354_p0 = scmp.ne.s32.totalorder %s2465_s15, %s2461_s30  ;;  %p342_p1 = scmp.eq.s32.totalorder %s341_s21, 0 }
   0xb   : > { %p355_p2 = scmp.eq.s32.totalorder %s2571_s17, 1  ;;  %p360_p3 = scmp.ne.s32.totalorder %s2461_s30, %s2457_s29 }
   0xc   : > { %p361_p4 = scmp.eq.s32.totalorder %s2014_s18, 1  ;;  %p2017_p7 = scmp.ge.s32.totalorder %s2469_s16, 1 }
   0xd   : > { %s2586_s22 = scalar_select %p342_p1, %s2465_s15, %s344_s20  }
   0xe   : > { %p2588_p5 = por %p355_p2, %p354_p0  ;;  %p2592_p6 = por %p361_p4, %p360_p3 }
   0xf   : > { %3009 = sst [smem:[#allocation6_spill]] %s2586_s22  ;;  %p420_p8 = scmp.lt.s32.totalorder %s2469_s16, 3 }
  0x11   : > { %p421_p9 = pnand %p2017_p7, %p420_p8 }
  0x13   : > { %424 = sbr.rel (%p421_p9) target bundleno = 1324 (0x52c), region = 68 }
  0x18   : > { %s3012_s1 = sld [smem:[#allocation10_spill]]  ;;  %vm524_vm0 = vcmask 1040384   ;;  %vm525_vm1 = vcmask 1041408   ;;  %p471_p10 = scmp.lt.s32.totalorder %s2571_s17, 1  ;;  %v2471_v1 = vmov 65535   ;;  %vm511_vm2 = vcmask 23552  }
  0x19   : > { %v526_v2 = vsel %vm524_vm0, 4294967295, %v2471_v1  ;;  %s3013_s0 = sld [smem:[#allocation9_spill]]  ;;  %vm1468_vm3 = vcmask 130048   ;;  %vm2473_vm4 = vmmov 0   ;;  %vm1586_vm5 = vcmask 261120   ;;  %s469_s20 = sand.u32 1, %s2461_s30  }
  0x1a   : > { %v2608_v5 = vsel %vm525_vm1, %v526_v2, 0  ;;  %s2611_s21 = scalar_select %p471_p10, %s2571_s17, 1  ;;  %vm1885_vm6 = vcmask 253952   ;;  %vm1893_vm7 = vcmask 516096   ;;  %vm1708_vm8 = vcmask 523264  }
  0x1b   : > { %s3016_s2 = sld [smem:[#allocation11_spill]]  ;;  %s2142_s25 = sshll.u32 %s2571_s17, 4 }
  0x1c   : > { %s2351_s27 = smul.u32 576, %s2611_s21  ;;  %s481_s28 = scalar_lea.vmem %s3002_s13, %s2611_s21 }
  0x1d   : > { %s1919_s22 = scalar_lea.hbm %s3003_s14, %s2142_s25  ;;  %s2474_s18 = smov [#allocation2]  }
  0x1e   : > { %v2027_v0 = vld [vmem:[%s3012_s1 + $0x2] sm:$0x3]  ;;  %v495_v3 = vld [vmem:[%s3012_s1] sm:$0x3]  ;;  %v2036_v4 = vld [vmem:[%s3012_s1 + $0x4] sm:$0x3] }
  0x1f   : > { %v2049_v6 = vld [vmem:[%s3012_s1 + $0x6] sm:$0x3]  ;;  %v529_v7 = vand.u32 %v2027_v0, %v2608_v5  ;;  %v609_v8 = vand.u32 %v2608_v5, %v495_v3  ;;  %v703_v9 = vand.u32 %v2036_v4, %v2608_v5  ;;  %v2062_v11 = vld [vmem:[%s3012_s1 + $0x8] sm:$0x3]  ;;  %s2627_s26 = scalar_lea.vmem %s3013_s0, %s2351_s27  ;;  %v2075_v12 = vld [vmem:[%s3012_s1 + $0xa] sm:$0x3] }
  0x20   : > { %v806_v10 = vand.u32 %v2049_v6, %v2608_v5  ;;  %v2019_v13 = vld [vmem:[%s2627_s26 + $0x90] sm:$0xff]  ;;  %v2634_v14 = vld [vmem:[%s2627_s26 + $0xa0] sm:$0xff]  ;;  %v909_v29 = vand.u32 %v2062_v11, %v2608_v5  ;;  %v1011_v32 = vand.u32 %v2075_v12, %v2608_v5  ;;  %v2088_v54 = vld [vmem:[%s3012_s1 + $0xc] sm:$0x3]  ;;  %s470_s0 = scalar_lea.vmem [#allocation2], %s469_s20  ;;  %s1903_s27 = scalar_lea.sflag [#allocation3], %s469_s20 }
  0x21   : > { %2211 = vmatprep.subr.bf16.mxu0 %v529_v7  ;;  %2221 = vmatprep.subr.bf16.mxu1 %v609_v8  ;;  %v483_v15 = vld [vmem:[%s2627_s26] sm:$0xff]  ;;  %v505_v16 = vpack.c.bf16 %v2634_v14, %v2019_v13  ;;  %v2639_v17 = vld [vmem:[%s2627_s26 + $0x10] sm:$0xff]  ;;  %v2101_v55 = vld [vmem:[%s3012_s1 + $0xe] sm:$0x3]  ;;  %v1114_v61 = vand.u32 %v2088_v54, %v2608_v5 }
  0x22   : > { %2212 = vmatpush3.bf16.msra.mxu0 %v529_v7  ;;  %2222 = vmatpush3.bf16.msra.mxu1 %v609_v8  ;;  %v2642_v18 = vld [vmem:[%s2627_s26 + $0xb0] sm:$0xff]  ;;  %v2645_v19 = vld [vmem:[%s2627_s26 + $0xc0] sm:$0xff]  ;;  %v491_v20 = vpack.c.bf16 %v2639_v17, %v483_v15  ;;  %v1217_v2 = vand.u32 %v2101_v55, %v2608_v5 }
  0x23   : > { %2231 = vmatprep.subr.bf16.mxu0 %v703_v9  ;;  %2241 = vmatprep.subr.bf16.mxu1 %v806_v10  ;;  %v506_v21 = vpack.c.bf16 %v2645_v19, %v2642_v18  ;;  %v2651_v22 = vld [vmem:[%s2627_s26 + $0x20] sm:$0xff]  ;;  %v2654_v23 = vld [vmem:[%s2627_s26 + $0x30] sm:$0xff] }
  0x24   : > { %v2657_v24 = vld [vmem:[%s2627_s26 + $0xd0] sm:$0xff]  ;;  %2213 = vmatprep.mubr.msk.bf16.mxu0 %vm511_vm2, %v505_v16  ;;  %v492_v25 = vpack.c.bf16 %v2654_v23, %v2651_v22  ;;  %v2663_v26 = vld [vmem:[%s2627_s26 + $0xe0] sm:$0xff]  ;;  %2223 = vmatprep.mubr.msk.bf16.mxu1 %vm511_vm2, %v491_v20 }
  0x25   : > { %v2666_v27 = vld [vmem:[%s2627_s26 + $0x40] sm:$0xff]  ;;  %v2669_v28 = vld [vmem:[%s2627_s26 + $0x50] sm:$0xff]  ;;  %2214 = vmatmul.mubr.msk.bf16.vlgmr.msra.gmra.mxu0 %vm511_vm2, %v506_v21  ;;  %v507_v30 = vpack.c.bf16 %v2663_v26, %v2657_v24 }
  0x26   : > { %v493_v31 = vpack.c.bf16 %v2669_v28, %v2666_v27  ;;  %2224 = vmatmul.mubr.msk.bf16.vlgmr.msra.gmra.mxu1 %vm511_vm2, %v492_v25  ;;  %2232 = vmatpush3.bf16.msra.mxu0 %v703_v9  ;;  %v2681_v33 = vld [vmem:[%s2627_s26 + $0xf0] sm:$0xff]  ;;  %v2684_v34 = vld [vmem:[%s2627_s26 + $0x100] sm:$0xff] }
  0x27   : > { %v2687_v35 = vld [vmem:[%s2627_s26 + $0x60] sm:$0xff]  ;;  %2217 = vmatprep.mubr.msk.bf16.mxu0 %vm511_vm2, %v507_v30  ;;  %v2692_v36 = vld [vmem:[%s2627_s26 + $0x70] sm:$0xff]  ;;  %2242 = vmatpush3.bf16.msra.mxu1 %v806_v10  ;;  %v508_v41 = vpack.c.bf16 %v2684_v34, %v2681_v33 }
  0x28   : > { %2227 = vmatprep.mubr.msk.bf16.mxu1 %vm511_vm2, %v493_v31  ;;  %v676_v37 = vld [vmem:[%s2627_s26 + $0x1] sm:$0xff]  ;;  %v2696_v38 = vld [vmem:[%s2627_s26 + $0x11] sm:$0xff]  ;;  %2251 = vmatprep.subr.bf16.mxu0 %v909_v29  ;;  %v494_v42 = vpack.c.bf16 %v2692_v36, %v2687_v35 }
  0x29   : > { %v2041_v39 = vld [vmem:[%s2627_s26 + $0x120] sm:$0xff]  ;;  %v2042_v40 = vld [vmem:[%s2627_s26 + $0x130] sm:$0xff]  ;;  %2261 = vmatprep.subr.bf16.mxu1 %v1011_v32  ;;  %v684_v43 = vpack.c.bf16 %v2696_v38, %v676_v37 }
  0x2a   : > { %v787_v44 = vpack.c.bf16 %v2042_v40, %v2041_v39  ;;  %v2709_v45 = vld [vmem:[%s2627_s26 + $0x21] sm:$0xff]  ;;  %v2712_v46 = vld [vmem:[%s2627_s26 + $0x31] sm:$0xff] }
  0x2b   : > { %v2043_v47 = vld [vmem:[%s2627_s26 + $0x140] sm:$0xff]  ;;  %v2044_v48 = vld [vmem:[%s2627_s26 + $0x150] sm:$0xff]  ;;  %v685_v53 = vpack.c.bf16 %v2712_v46, %v2709_v45 }
  0x2c   : > { %v2718_v49 = vld [vmem:[%s2627_s26 + $0x41] sm:$0xff]  ;;  %v2721_v50 = vld [vmem:[%s2627_s26 + $0x51] sm:$0xff]  ;;  %v788_v56 = vpack.c.bf16 %v2044_v48, %v2043_v47  ;;  %v1198_v47 = vpack.c.bf16 %v2642_v18, %v2634_v14  ;;  %v1096_v48 = vpack.c.bf16 %v2666_v27, %v2654_v23  ;;  %v1200_v14 = vpack.c.bf16 %v2681_v33, %v2663_v26 }
  0x2d   : > { %2218 = vmatmul.mubr.msk.bf16.gmra.mxu0 %vm511_vm2, %v508_v41  ;;  %v2045_v51 = vld [vmem:[%s2627_s26 + $0x160] sm:$0xff]  ;;  %v2046_v52 = vld [vmem:[%s2627_s26 + $0x170] sm:$0xff]  ;;  %v686_v57 = vpack.c.bf16 %v2721_v50, %v2718_v49  ;;  %v1301_v26 = vpack.c.bf16 %v2718_v49, %v2712_v46 }
  0x2e   : > { %2228 = vmatmul.mubr.msk.bf16.gmra.mxu1 %vm511_vm2, %v494_v42  ;;  %2233 = vmatprep.mubr.msk.bf16.mxu0 %vm511_vm2, %v684_v43  ;;  %v789_v58 = vpack.c.bf16 %v2046_v52, %v2045_v51  ;;  %v2736_v59 = vld [vmem:[%s2627_s26 + $0x61] sm:$0xff]  ;;  %v2739_v60 = vld [vmem:[%s2627_s26 + $0x71] sm:$0xff]  ;;  %v1199_v51 = vpack.c.bf16 %v2657_v24, %v2645_v19  ;;  %v1300_v24 = vpack.c.bf16 %v2709_v45, %v2696_v38 }
  0x2f   : > { %2243 = vmatprep.mubr.msk.bf16.mxu1 %vm511_vm2, %v787_v44  ;;  %v2047_v62 = vld [vmem:[%s2627_s26 + $0x180] sm:$0xff]  ;;  %v2048_v63 = vld [vmem:[%s2627_s26 + $0x190] sm:$0xff]  ;;  %v687_v6 = vpack.c.bf16 %v2739_v60, %v2736_v59  ;;  %v1302_v27 = vpack.c.bf16 %v2736_v59, %v2721_v50 }
  0x30   : > { %v2054_v0 = vld [vmem:[%s2627_s26 + $0x1b0] sm:$0xff]  ;;  %v2055_v1 = vld [vmem:[%s2627_s26 + $0x1c0] sm:$0xff]  ;;  %v790_v7 = vpack.c.bf16 %v2048_v63, %v2047_v62 }
  0x31   : > { %v2067_v3 = vld [vmem:[%s2627_s26 + $0x121] sm:$0xff]  ;;  %v2068_v4 = vld [vmem:[%s2627_s26 + $0x131] sm:$0xff]  ;;  %v890_v8 = vpack.c.bf16 %v2055_v1, %v2054_v0 }
  0x32   : > { %v992_v9 = vpack.c.bf16 %v2068_v4, %v2067_v3  ;;  %v2056_v10 = vld [vmem:[%s2627_s26 + $0x1d0] sm:$0xff]  ;;  %v2057_v11 = vld [vmem:[%s2627_s26 + $0x1e0] sm:$0xff] }
  0x33   : > { %v2069_v12 = vld [vmem:[%s2627_s26 + $0x141] sm:$0xff]  ;;  %v2070_v13 = vld [vmem:[%s2627_s26 + $0x151] sm:$0xff]  ;;  %v891_v25 = vpack.c.bf16 %v2057_v11, %v2056_v10 }
  0x34   : > { %v2058_v15 = vld [vmem:[%s2627_s26 + $0x1f0] sm:$0xff]  ;;  %v2059_v16 = vld [vmem:[%s2627_s26 + $0x200] sm:$0xff]  ;;  %v993_v30 = vpack.c.bf16 %v2070_v13, %v2069_v12 }
  0x35   : > { %2234 = vmatmul.mubr.msk.bf16.vlgmr.msra.gmra.mxu0 %vm511_vm2, %v685_v53  ;;  %v2071_v20 = vld [vmem:[%s2627_s26 + $0x161] sm:$0xff]  ;;  %v2072_v21 = vld [vmem:[%s2627_s26 + $0x171] sm:$0xff]  ;;  %v892_v31 = vpack.c.bf16 %v2059_v16, %v2058_v15 }
  0x36   : > { %2252 = vmatpush3.bf16.msra.mxu0 %v909_v29  ;;  %2244 = vmatmul.mubr.msk.bf16.vlgmr.msra.gmra.mxu1 %vm511_vm2, %v788_v56  ;;  %v2114_v29 = vld [vmem:[%s3012_s1 + $0x10] sm:$0x3]  ;;  %v2061_v40 = vld [vmem:[%s2627_s26 + $0x220] sm:$0xff]  ;;  %s2413_s1 = sshll.u32 %s2474_s18, 4  ;;  %s2414_s1 = int_to_ptr.vmem [resolvable:$false] %s2413_s1 }
  0x37   : > { %2237 = vmatprep.mubr.msk.bf16.mxu0 %vm511_vm2, %v686_v57  ;;  %2247 = vmatprep.mubr.msk.bf16.mxu1 %vm511_vm2, %v789_v58  ;;  %v1319_v37 = vand.u32 %v2114_v29, %v2608_v5  ;;  %v2060_v39 = vld [vmem:[%s2627_s26 + $0x210] sm:$0xff]  ;;  %v2073_v41 = vld [vmem:[%s2627_s26 + $0x181] sm:$0xff]  ;;  %v1095_v5 = vpack.c.bf16 %v2651_v22, %v2639_v17  ;;  %v1097_v17 = vpack.c.bf16 %v2687_v35, %v2669_v28  ;;  %s2415_s17 = scalar_lea.vmem %s2414_s1, 32 }
  0x38   : > { %2262 = vmatpush3.bf16.msra.mxu1 %v1011_v32  ;;  %2271 = vmatprep.subr.bf16.mxu0 %v1114_v61  ;;  %v994_v32 = vpack.c.bf16 %v2072_v21, %v2071_v20  ;;  %v2074_v42 = vld [vmem:[%s2627_s26 + $0x191] sm:$0xff]  ;;  %v893_v43 = vpack.c.bf16 %v2061_v40, %v2060_v39  ;;  %v2087_v18 = vld [vmem:[%s2627_s26 + $0x80] sm:$0xff] }
  0x39   : > { %2281 = vmatprep.subr.bf16.mxu1 %v1217_v2  ;;  %v995_v44 = vpack.c.bf16 %v2074_v42, %v2073_v41  ;;  %v2100_v22 = vld [vmem:[%s2627_s26 + $0x110] sm:$0xff]  ;;  %v1098_v19 = vpack.c.bf16 %v2087_v18, %v2692_v36  ;;  %v2113_v28 = vld [vmem:[%s2627_s26 + $0x81] sm:$0xff]  ;;  %s478_s26 = scalar_lea.vmem %s3001_s12, %s2611_s21  ;;  %s1921_s21 = sshll.u32 %s470_s0, 4  ;;  %s1922_s21 = int_to_ptr.vmem [resolvable:$true] %s1921_s21 }
  0x3a   : > { %v1201_v23 = vpack.c.bf16 %v2100_v22, %v2684_v34  ;;  %v1303_v33 = vpack.c.bf16 %v2113_v28, %v2739_v60  ;;  %v2394_v34 = vld [vmem:[%s2992_s3] sm:$0xff]   ;;  %p2416_p0 = scmp.lt.s32.totalorder %s1922_s21, %s2414_s1 }
  0x3d   : > { %2238 = vmatmul.mubr.msk.bf16.gmra.mxu0 %vm511_vm2, %v687_v6 }
  0x3e   : > { %2248 = vmatmul.mubr.msk.bf16.gmra.mxu1 %vm511_vm2, %v790_v7  ;;  %2253 = vmatprep.mubr.msk.bf16.mxu0 %vm511_vm2, %v890_v8 }
  0x3f   : > { %2263 = vmatprep.mubr.msk.bf16.mxu1 %vm511_vm2, %v992_v9 }
  0x45   : > { %2254 = vmatmul.mubr.msk.bf16.vlgmr.msra.gmra.mxu0 %vm511_vm2, %v891_v25 }
  0x46   : > { %2272 = vmatpush3.bf16.msra.mxu0 %v1114_v61  ;;  %2264 = vmatmul.mubr.msk.bf16.vlgmr.msra.gmra.mxu1 %vm511_vm2, %v993_v30 }
  0x47   : > { %2257 = vmatprep.mubr.msk.bf16.mxu0 %vm511_vm2, %v892_v31  ;;  %2267 = vmatprep.mubr.msk.bf16.mxu1 %vm511_vm2, %v994_v32 }
  0x48   : > { %2282 = vmatpush3.bf16.msra.mxu1 %v1217_v2  ;;  %2291 = vmatprep.subr.bf16.mxu0 %v1319_v37 }
  0x49   : > { %2301 = vmatprep.subr.bf16.mxu1 %v2394_v34 }
  0x4d   : > { %2258 = vmatmul.mubr.msk.bf16.gmra.mxu0 %vm511_vm2, %v893_v43 }
  0x4e   : > { %2268 = vmatmul.mubr.msk.bf16.gmra.mxu1 %vm511_vm2, %v995_v44  ;;  %2273 = vmatprep.mubr.msk.bf16.mxu0 %vm511_vm2, %v1095_v5 }
  0x4f   : > { %2283 = vmatprep.mubr.msk.bf16.mxu1 %vm511_vm2, %v1198_v47 }
  0x55   : > { %2274 = vmatmul.mubr.msk.bf16.vlgmr.msra.gmra.mxu0 %vm511_vm2, %v1096_v48 }
  0x56   : > { %2292 = vmatpush3.bf16.msra.mxu0 %v1319_v37  ;;  %2284 = vmatmul.mubr.msk.bf16.vlgmr.msra.gmra.mxu1 %vm511_vm2, %v1199_v51 }
  0x57   : > { %2277 = vmatprep.mubr.msk.bf16.mxu0 %vm511_vm2, %v1097_v17  ;;  %2287 = vmatprep.mubr.msk.bf16.mxu1 %vm511_vm2, %v1200_v14 }
  0x58   : > { %2302 = vmatpush3.bf16.msra.mxu1 %v2394_v34 }
  0x5d   : > { %2278 = vmatmul.mubr.msk.bf16.gmra.mxu0 %vm511_vm2, %v1098_v19 }
  0x5e   : > { %2288 = vmatmul.mubr.msk.bf16.gmra.mxu1 %vm511_vm2, %v1201_v23  ;;  %2293 = vmatprep.mubr.msk.bf16.mxu0 %vm511_vm2, %v1300_v24 }
  0x65   : > { %2294 = vmatmul.mubr.msk.bf16.vlgmr.msra.gmra.mxu0 %vm511_vm2, %v1301_v26 }
  0x66   : > { %2297 = vmatprep.mubr.msk.bf16.mxu0 %vm511_vm2, %v1302_v27 }
  0x6d   : > { %2298 = vmatmul.mubr.msk.bf16.gmra.mxu0 %vm511_vm2, %v1303_v33 }
  0xe5   : > { %v2215_v35 = vpop.f32.mrf.mxu0 }
  0xe6   : > { %v2225_v36 = vpop.f32.mrf.mxu1 }
  0xe7   : > { %v565_v38 = vpop.f32.mrf.mxu0  ;;  %v654_v42 = vadd.f32 %v2225_v36, %v2215_v35 }
  0xe8   : > { %v645_v45 = vpop.f32.mrf.mxu1 }
  0xe9   : > { %v2216_v46 = vpop.f32.mrf.mxu0  ;;  %v646_v5 = vadd.f32 %v645_v45, %v565_v38 }
  0xea   : > { %v2226_v49 = vpop.f32.mrf.mxu1 }
  0xeb   : > { %v568_v50 = vpop.f32.mrf.mxu0  ;;  %v657_v17 = vadd.f32 %v2226_v49, %v2216_v46 }
  0xec   : > { %v648_v52 = vpop.f32.mrf.mxu1 }
  0xed   : > { %v2219_v53 = vpop.f32.mrf.mxu0  ;;  %v649_v19 = vadd.f32 %v648_v52, %v568_v50 }
  0xee   : > { %v2229_v54 = vpop.f32.mrf.mxu1 }
  0xef   : > { %v581_v55 = vpop.f32.mrf.mxu0  ;;  %v670_v35 = vadd.f32 %v2229_v54, %v2219_v53 }
  0xf0   : > { %v661_v56 = vpop.f32.mrf.mxu1 }
  0xf1   : > { %v2820_v57 = vpop.f32.mrf.mxu0 }
  0xf2   : > { %v2230_v58 = vpop.f32.mrf.mxu1 }
  0xf3   : > { %v2822_v59 = vpop.f32.mrf.mxu0  ;;  %v673_v50 = vadd.f32 %v2230_v58, %v2820_v57 }
  0xf4   : > { %v2824_v60 = vpop.f32.mrf.mxu1 }
  0xf5   : > { %v2235_v61 = vpop.f32.mrf.mxu0 }
  0xf6   : > { %v2245_v62 = vpop.f32.mrf.mxu1  ;;  %v772_v47 = vadd.f32 %v2235_v61, %v654_v42  ;;  %v662_v61 = vadd.f32 %v661_v56, %v581_v55 }
  0xf7   : > { %v739_v63 = vpop.f32.mrf.mxu0 }
  0xf8   : > { %v842_v0 = vpop.f32.mrf.mxu1  ;;  %v770_v14 = vadd.f32 %v739_v63, %v646_v5  ;;  %v875_v23 = vadd.f32 %v2245_v62, %v772_v47 }
  0xf9   : > { %v2236_v1 = vpop.f32.mrf.mxu0 }
  0xfa   : > { %v2246_v2 = vpop.f32.mrf.mxu1  ;;  %v773_v24 = vadd.f32 %v2236_v1, %v657_v17  ;;  %v873_v28 = vadd.f32 %v842_v0, %v770_v14  ;;  %v665_v0 = vadd.f32 %v2824_v60, %v2822_v59  ;;  %v2845_v60 = vld [vmem:[%s3016_s2] ss:$0 sm:$0xff] }
  0xfb   : > { %v742_v3 = vpop.f32.mrf.mxu0 }
  0xfc   : > { %v845_v4 = vpop.f32.mrf.mxu1  ;;  %v771_v33 = vadd.f32 %v742_v3, %v649_v19  ;;  %v876_v38 = vadd.f32 %v2246_v2, %v773_v24 }
  0xfd   : > { %v2239_v6 = vpop.f32.mrf.mxu0 }
  0xfe   : > { %v2249_v7 = vpop.f32.mrf.mxu1  ;;  %v776_v42 = vadd.f32 %v2239_v6, %v670_v35  ;;  %v874_v46 = vadd.f32 %v845_v4, %v771_v33 }
  0xff   : > { %v755_v8 = vpop.f32.mrf.mxu0 }
 0x100   : > { %v858_v9 = vpop.f32.mrf.mxu1  ;;  %v774_v52 = vadd.f32 %v755_v8, %v662_v61 }
 0x101   : > { %v2240_v10 = vpop.f32.mrf.mxu0 }
 0x102   : > { %v2826_v11 = vpop.f32.mrf.mxu1  ;;  %v777_v2 = vadd.f32 %v2240_v10, %v673_v50  ;;  %v877_v4 = vadd.f32 %v858_v9, %v774_v52 }
 0x103   : > { %v758_v12 = vpop.f32.mrf.mxu0 }
 0x104   : > { %v2828_v13 = vpop.f32.mrf.mxu1  ;;  %v775_v55 = vadd.f32 %v758_v12, %v665_v0  ;;  %v880_v47 = vadd.f32 %v2826_v11, %v777_v2 }
 0x105   : > { %v2255_v15 = vpop.f32.mrf.mxu0 }
 0x106   : > { %v2265_v16 = vpop.f32.mrf.mxu1  ;;  %v978_v34 = vadd.f32 %v2255_v15, %v875_v23  ;;  %v879_v15 = vadd.f32 %v2249_v7, %v776_v42  ;;  %v878_v7 = vadd.f32 %v2828_v13, %v775_v55 }
 0x107   : > { %v945_v20 = vpop.f32.mrf.mxu0 }
 0x108   : > { %v1047_v21 = vpop.f32.mrf.mxu1  ;;  %v976_v45 = vadd.f32 %v945_v20, %v873_v28  ;;  %v1080_v49 = vadd.f32 %v2265_v16, %v978_v34 }
 0x109   : > { %v2256_v25 = vpop.f32.mrf.mxu0 }
 0x10a   : > { %v2266_v29 = vpop.f32.mrf.mxu1  ;;  %v979_v63 = vadd.f32 %v2256_v25, %v876_v38  ;;  %v1078_v3 = vadd.f32 %v1047_v21, %v976_v45 }
 0x10b   : > { %v948_v30 = vpop.f32.mrf.mxu0 }
 0x10c   : > { %v1050_v31 = vpop.f32.mrf.mxu1  ;;  %v977_v53 = vadd.f32 %v948_v30, %v874_v46  ;;  %v1081_v56 = vadd.f32 %v2266_v29, %v979_v63 }
 0x10d   : > { %v2259_v32 = vpop.f32.mrf.mxu0 }
 0x10e   : > { %v2830_v37 = vpop.f32.mrf.mxu1  ;;  %v982_v16 = vadd.f32 %v2259_v32, %v879_v15  ;;  %v1079_v57 = vadd.f32 %v1050_v31, %v977_v53 }
 0x10f   : > { %v961_v39 = vpop.f32.mrf.mxu0 }
 0x110   : > { %v2832_v40 = vpop.f32.mrf.mxu1  ;;  %v980_v17 = vadd.f32 %v961_v39, %v877_v4  ;;  %v1084_v21 = vadd.f32 %v2830_v37, %v982_v16 }
 0x111   : > { %v2260_v41 = vpop.f32.mrf.mxu0 }
 0x112   : > { %v2834_v43 = vpop.f32.mrf.mxu1  ;;  %v983_v29 = vadd.f32 %v2260_v41, %v880_v47  ;;  %v1082_v14 = vadd.f32 %v2832_v40, %v980_v17 }
 0x113   : > { %3014 = vst [vmem:[#allocation7_spill] sm:$0xff] %v2834_v43  ;;  %v964_v44 = vpop.f32.mrf.mxu0 }
 0x114   : > { %v2836_v48 = vpop.f32.mrf.mxu1  ;;  %v981_v32 = vadd.f32 %v964_v44, %v878_v7 }
 0x115   : > { %3015 = vst [vmem:[#allocation8_spill] sm:$0xff] %v2836_v48  ;;  %v2275_v51 = vpop.f32.mrf.mxu0 }
 0x116   : > { %v2285_v18 = vpop.f32.mrf.mxu1  ;;  %v1183_v54 = vadd.f32 %v2275_v51, %v1080_v49 }
 0x117   : > { %v1150_v22 = vpop.f32.mrf.mxu0 }
 0x118   : > { %v1253_v26 = vpop.f32.mrf.mxu1  ;;  %v1181_v6 = vadd.f32 %v1150_v22, %v1078_v3  ;;  %v1286_v58 = vadd.f32 %v2285_v18, %v1183_v54 }
 0x119   : > { %v2276_v27 = vpop.f32.mrf.mxu0 }
 0x11a   : > { %v2286_v43 = vpop.f32.mrf.mxu1  ;;  %v1184_v8 = vadd.f32 %v2276_v27, %v1081_v56  ;;  %v1284_v10 = vadd.f32 %v1253_v26, %v1181_v6  ;;  %v3017_v26 = vld [vmem:[#allocation7_spill] sm:$0xff] }
 0x11b   : > { %v1153_v36 = vpop.f32.mrf.mxu0  ;;  %v1085_v27 = vadd.f32 %v3017_v26, %v983_v29 }
 0x11c   : > { %v1256_v62 = vpop.f32.mrf.mxu1  ;;  %v1182_v12 = vadd.f32 %v1153_v36, %v1079_v57  ;;  %v1287_v51 = vadd.f32 %v2286_v43, %v1184_v8  ;;  %v3018_v33 = vld [vmem:[#allocation8_spill] sm:$0xff] }
 0x11d   : > { %v2279_v48 = vpop.f32.mrf.mxu0  ;;  %v1083_v44 = vadd.f32 %v3018_v33, %v981_v32 }
 0x11e   : > { %v2289_v25 = vpop.f32.mrf.mxu1  ;;  %v1187_v18 = vadd.f32 %v2279_v48, %v1084_v21  ;;  %v1285_v19 = vadd.f32 %v1256_v62, %v1182_v12 }
 0x11f   : > { %v1166_v1 = vpop.f32.mrf.mxu0 }
 0x120   : > { %v1269_v30 = vpop.f32.mrf.mxu1  ;;  %v1185_v37 = vadd.f32 %v1166_v1, %v1082_v14  ;;  %v1290_v36 = vadd.f32 %v2289_v25, %v1187_v18 }
 0x121   : > { %v2280_v20 = vpop.f32.mrf.mxu0 }
 0x122   : > { %v2290_v41 = vpop.f32.mrf.mxu1  ;;  %v1188_v40 = vadd.f32 %v2280_v20, %v1085_v27  ;;  %v1288_v49 = vadd.f32 %v1269_v30, %v1185_v37 }
 0x123   : > { %v1169_v5 = vpop.f32.mrf.mxu0 }
 0x124   : > { %v1186_v45 = vadd.f32 %v1169_v5, %v1083_v44  ;;  %v1272_v63 = vpop.f32.mrf.mxu1  ;;  %v1291_v3 = vadd.f32 %v2290_v41, %v1188_v40  ;;  %v2399_v40 = vld [vmem:[%s2997_s8 + $0x18] sm:$0xff]  }
 0x125   : > { %v2295_v59 = vpop.f32.mrf.mxu0 }
 0x126   : > { %v1388_v9 = vadd.f32 %v2295_v59, %v1286_v58  ;;  %v1289_v20 = vadd.f32 %v1272_v63, %v1186_v45  ;;  %v2120_v45 = vld [vmem:[%s2993_s4] ss:$0 sm:$0xff] }
 0x127   : > { %v1355_v31 = vpop.f32.mrf.mxu0 }
 0x128   : > { %v1403_v11 = vadd.f32 %v2845_v60, %v1388_v9  ;;  %v1386_v39 = vadd.f32 %v1355_v31, %v1284_v10 }
 0x129   : > { %v2296_v22 = vpop.f32.mrf.mxu0 }
 0x12a   : > { %v1411_v23 = vadd.f32 3.0, %v1403_v11  ;;  %v1401_v13 = vadd.f32 %v2845_v60, %v1386_v39  ;;  %v1389_v24 = vadd.f32 %v2296_v22, %v1287_v51 }
 0x12b   : > { %v1358_v28 = vpop.f32.mrf.mxu0 }
 0x12c   : > { %v1409_v43 = vadd.f32 3.0, %v1401_v13  ;;  %v1404_v34 = vadd.f32 %v2845_v60, %v1389_v24  ;;  %v1387_v35 = vadd.f32 %v1358_v28, %v1285_v19  ;;  %v1419_v48 = vmax.f32 %v1411_v23, 0.0 }
 0x12d   : > { %v2299_v38 = vpop.f32.mrf.mxu0 }
 0x12e   : > { %v1417_v61 = vmax.f32 %v1409_v43, 0.0  ;;  %v1412_v42 = vadd.f32 3.0, %v1404_v34  ;;  %v1402_v46 = vadd.f32 %v2845_v60, %v1387_v35  ;;  %v1392_v50 = vadd.f32 %v2299_v38, %v1290_v36  ;;  %v2396_v36 = vld [vmem:[%s2994_s5] sm:$0xff]   ;;  %v2401_v38 = vld [vmem:[%s2997_s8 + $0x8] sm:$0xff]  }
 0x12f   : > { %v1371_v52 = vpop.f32.mrf.mxu0  ;;  %v1427_v53 = vmin.f32 %v1419_v48, 6.0  ;;  %v2472_v35 = vmov 0.0   ;;  %v2400_v48 = vld [vmem:[%s2997_s8 + $0x10] sm:$0xff]  }
 0x130   : > { %v1425_v62 = vmin.f32 %v1417_v61, 6.0  ;;  %v1420_v1 = vmax.f32 %v1412_v42, 0.0  ;;  %v1410_v0 = vadd.f32 3.0, %v1402_v46  ;;  %v1407_v54 = vadd.f32 %v2845_v60, %v1392_v50  ;;  %2311 = vmatprep.subr.bf16.mxu0 %v2472_v35  ;;  %2319 = vmatprep.subr.bf16.mxu1 %v2472_v35 }
 0x131   : > { %v1390_v15 = vadd.f32 %v1371_v52, %v1288_v49  ;;  %v2300_v2 = vpop.f32.mrf.mxu0  ;;  %v1435_v47 = vmul.f32 %v1427_v53, %v1403_v11  ;;  %2315 = vmatprep.mubr.msk.bf16.mxu0 %vm2473_vm4, %v2472_v35 }
 0x132   : > { %v1428_v55 = vmin.f32 %v1420_v1, 6.0  ;;  %v1418_v56 = vmax.f32 %v1410_v0, 0.0  ;;  %v1415_v6 = vadd.f32 3.0, %v1407_v54  ;;  %v1393_v16 = vadd.f32 %v2300_v2, %v1291_v3 }
 0x133   : > { %v1405_v4 = vadd.f32 %v2845_v60, %v1390_v15  ;;  %v1374_v25 = vpop.f32.mrf.mxu0  ;;  %v1433_v5 = vmul.f32 %v1425_v62, %v1401_v13  ;;  %v1443_v51 = vmul.f32 0.16666667, %v1435_v47 }
 0x134   : > { %v1436_v57 = vmul.f32 %v1428_v55, %v1404_v34  ;;  %v1426_v58 = vmin.f32 %v1418_v56, 6.0  ;;  %v1391_v8 = vadd.f32 %v1374_v25, %v1289_v20  ;;  %v1423_v17 = vmax.f32 %v1415_v6, 0.0  ;;  %v2395_v34 = vld [vmem:[%s2994_s5 + $0x8] sm:$0xff]  }
 0x135   : > { %v1413_v59 = vadd.f32 3.0, %v1405_v4  ;;  %v1408_v7 = vadd.f32 %v2845_v60, %v1393_v16  ;;  %v1441_v30 = vmul.f32 0.16666667, %v1433_v5  ;;  %2312 = vmatpush3.bf16.msra.mxu0 %v2395_v34 }
 0x136   : > { %v1434_v10 = vmul.f32 %v1426_v58, %v1402_v46  ;;  %v1406_v12 = vadd.f32 %v2845_v60, %v1391_v8  ;;  %v1444_v9 = vmul.f32 0.16666667, %v1436_v57  ;;  %v1431_v39 = vmin.f32 %v1423_v17, 6.0  ;;  %2313 = vmatprep.subr.bf16.mxu0 %v2472_v35 }
 0x137   : > { %v1421_v21 = vmax.f32 %v1413_v59, 0.0  ;;  %v1416_v29 = vadd.f32 3.0, %v1408_v7 }
 0x138   : > { %v1442_v31 = vmul.f32 0.16666667, %v1434_v10  ;;  %v1414_v32 = vadd.f32 3.0, %v1406_v12  ;;  %v1450_v19 = vpack.c.bf16 %v1444_v9, %v1443_v51  ;;  %v1439_v60 = vmul.f32 %v1431_v39, %v1407_v54 }
 0x139   : > { %v1429_v14 = vmin.f32 %v1421_v21, 6.0  ;;  %v1424_v18 = vmax.f32 %v1416_v29, 0.0  ;;  %2314 = vmatpush3.bf16.msra.mxu0 %v2396_v36 }
 0x13a   : > { %v1449_v22 = vpack.c.bf16 %v1442_v31, %v1441_v30  ;;  %v1422_v11 = vmax.f32 %v1414_v32, 0.0  ;;  %v1447_v33 = vmul.f32 0.16666667, %v1439_v60  ;;  %2331 = vmatprep.subr.bf16.mxu0 %v2472_v35 }
 0x13b   : > { %v1432_v23 = vmin.f32 %v1424_v18, 6.0  ;;  %v1437_v13 = vmul.f32 %v1429_v14, %v1405_v4 }
 0x13c   : > { %v1430_v24 = vmin.f32 %v1422_v11, 6.0  ;;  %2303 = vmatprep.mubr.msk.bf16.mxu1 %vm1468_vm3, %v1449_v22 }
 0x13d   : > { %v1440_v26 = vmul.f32 %v1432_v23, %v1408_v7  ;;  %2304 = vmatmul.mubr.msk.bf16.vlgmr.msra.gmra.mxu1 %vm1468_vm3, %v1450_v19  ;;  %v1445_v41 = vmul.f32 0.16666667, %v1437_v13 }
 0x13e   : > { %v1438_v27 = vmul.f32 %v1430_v24, %v1406_v12  ;;  %2320 = vmatpush3.bf16.msra.mxu1 %v2399_v40 }
 0x13f   : > { %v1448_v37 = vmul.f32 0.16666667, %v1440_v26  ;;  %2321 = vmatprep.subr.bf16.mxu1 %v2472_v35 }
 0x140   : > { %v1446_v28 = vmul.f32 0.16666667, %v1438_v27 }
 0x141   : > { %v1452_v43 = vpack.c.bf16 %v1448_v37, %v1447_v33 }
 0x142   : > { %v1451_v44 = vpack.c.bf16 %v1446_v28, %v1445_v41  ;;  %2322 = vmatpush3.bf16.msra.mxu1 %v2400_v48 }
 0x143   : > { %2323 = vmatprep.subr.bf16.mxu1 %v2472_v35 }
 0x144   : > { %2307 = vmatprep.mubr.msk.bf16.mxu1 %vm1468_vm3, %v1451_v44 }
 0x145   : > { %2308 = vmatmul.mubr.msk.bf16.gmra.mxu1 %vm1468_vm3, %v1452_v43 }
 0x146   : > { %2327 = vmatprep.mubr.msk.bf16.mxu1 %vm2473_vm4, %v2472_v35  ;;  %2324 = vmatpush3.bf16.msra.mxu1 %v2401_v38 }
 0x147   : > { %2325 = vmatprep.subr.bf16.mxu1 %v2472_v35 }
 0x1fd   : > { %v2305_v61 = vpop.f32.mrf.mxu1 }
 0x1fe   : > { %v1524_v42 = vadd.f32 %v2305_v61, %v2120_v45 }
 0x1ff   : > { %v1515_v46 = vpop.f32.mrf.mxu1 }
 0x200   : > { %v1548_v49 = vadd.f32 3.0, %v1524_v42  ;;  %v1516_v63 = vadd.f32 %v2120_v45, %v1515_v46 }
 0x201   : > { %v2306_v50 = vpop.f32.mrf.mxu1 }
 0x202   : > { %v1556_v52 = vmax.f32 %v1548_v49, 0.0  ;;  %v1546_v62 = vadd.f32 3.0, %v1516_v63  ;;  %v1527_v1 = vadd.f32 %v2306_v50, %v2120_v45 }
 0x203   : > { %v1518_v0 = vpop.f32.mrf.mxu1 }
 0x204   : > { %v1554_v3 = vmax.f32 %v1546_v62, 0.0  ;;  %v1549_v53 = vadd.f32 3.0, %v1527_v1  ;;  %v1519_v54 = vadd.f32 %v2120_v45, %v1518_v0  ;;  %v1564_v2 = vmin.f32 %v1556_v52, 6.0 }
 0x205   : > { %v2309_v15 = vpop.f32.mrf.mxu1 }
 0x206   : > { %v1562_v20 = vmin.f32 %v1554_v3, 6.0  ;;  %v1557_v55 = vmax.f32 %v1549_v53, 0.0  ;;  %v1547_v56 = vadd.f32 3.0, %v1519_v54  ;;  %v1540_v6 = vadd.f32 %v2309_v15, %v2120_v45 }
 0x207   : > { %v1531_v4 = vpop.f32.mrf.mxu1  ;;  %v1572_v47 = vmul.f32 %v1564_v2, %v1524_v42 }
 0x208   : > { %v1570_v16 = vmul.f32 %v1562_v20, %v1516_v63  ;;  %v1565_v25 = vmin.f32 %v1557_v55, 6.0  ;;  %v1555_v5 = vmax.f32 %v1547_v56, 0.0  ;;  %v1552_v57 = vadd.f32 3.0, %v1540_v6  ;;  %v2397_v20 = vld [vmem:[%s2996_s7 + $0x8] sm:$0xff]   ;;  %v2398_v56 = vld [vmem:[%s2996_s7] sm:$0xff]  }
 0x209   : > { %v1532_v58 = vadd.f32 %v2120_v45, %v1531_v4  ;;  %v2310_v8 = vpop.f32.mrf.mxu1  ;;  %v1580_v51 = vmul.f32 0.16666667, %v1572_v47  ;;  %v1615_v4 = vld [vmem:[%s2995_s6] sm:$0x1] }
 0x20a   : > { %v1563_v17 = vmin.f32 %v1555_v5, 6.0  ;;  %v1560_v59 = vmax.f32 %v1552_v57, 0.0  ;;  %v1543_v10 = vadd.f32 %v2310_v8, %v2120_v45  ;;  %v1578_v9 = vmul.f32 0.16666667, %v1570_v16  ;;  %v2403_v57 = vld [vmem:[%s2999_s10 + $0x18] sm:$0xff]  }
 0x20b   : > { %v1550_v7 = vadd.f32 3.0, %v1532_v58  ;;  %v1534_v12 = vpop.f32.mrf.mxu1  ;;  %v1573_v21 = vmul.f32 %v1565_v25, %v1527_v1  ;;  %v1590_v37 = vsel %vm1586_vm5, %v1580_v51, 0.0 }
 0x20c   : > { %v1571_v29 = vmul.f32 %v1563_v17, %v1519_v54  ;;  %v1535_v30 = vadd.f32 %v2120_v45, %v1534_v12  ;;  %v1553_v32 = vadd.f32 3.0, %v1543_v10  ;;  %v1568_v14 = vmin.f32 %v1560_v59, 6.0  ;;  %v2404_v17 = vld [vmem:[%s2999_s10 + $0x10] sm:$0xff]  }
 0x20d   : > { %v1558_v31 = vmax.f32 %v1550_v7, 0.0  ;;  %v1587_v19 = vsel %vm1586_vm5, %v1578_v9, 0.0  ;;  %v1581_v23 = vmul.f32 0.16666667, %v1573_v21  ;;  %v2405_v9 = vld [vmem:[%s2999_s10 + $0x8] sm:$0xff]   ;;  %v2406_v21 = vld [vmem:[%s2999_s10] sm:$0xff]  }
 0x20e   : > { %v1579_v39 = vmul.f32 0.16666667, %v1571_v29  ;;  %v1551_v18 = vadd.f32 3.0, %v1535_v30  ;;  %v1561_v11 = vmax.f32 %v1553_v32, 0.0  ;;  %v1576_v41 = vmul.f32 %v1568_v14, %v1540_v6  ;;  %v2402_v6 = vld [vmem:[%s2997_s8] sm:$0xff]  }
 0x20f   : > { %v1566_v22 = vmin.f32 %v1558_v31, 6.0  ;;  %v1592_v43 = vsel %vm1586_vm5, %v1581_v23, 0.0  ;;  %2326 = vmatpush3.bf16.msra.mxu1 %v2402_v6 }
 0x210   : > { %v1588_v13 = vsel %vm1586_vm5, %v1579_v39, 0.0  ;;  %v1559_v24 = vmax.f32 %v1551_v18, 0.0  ;;  %v1569_v27 = vmin.f32 %v1561_v11, 6.0  ;;  %v1584_v48 = vmul.f32 0.16666667, %v1576_v41  ;;  %2339 = vmatprep.subr.bf16.mxu1 %v2472_v35 }
 0x211   : > { %v1589_v60 = vadd.f32 %v1588_v13, %v1587_v19  ;;  %v1574_v26 = vmul.f32 %v1566_v22, %v1532_v58 }
 0x212   : > { %v1567_v28 = vmin.f32 %v1559_v24, 6.0  ;;  %v1577_v34 = vmul.f32 %v1569_v27, %v1543_v10  ;;  %v1598_v63 = vsel %vm1586_vm5, %v1584_v48, 0.0 }
 0x213   : > { %v1591_v33 = vadd.f32 %v1590_v37, %v1589_v60  ;;  %v1582_v44 = vmul.f32 0.16666667, %v1574_v26 }
 0x214   : > { %v1575_v36 = vmul.f32 %v1567_v28, %v1535_v30  ;;  %v1585_v42 = vmul.f32 0.16666667, %v1577_v34  ;;  %v1804_v30 = vld [vmem:[%s2998_s9] sm:$0x1] }
 0x215   : > { %v1593_v40 = vadd.f32 %v1592_v43, %v1591_v33  ;;  %v1594_v38 = vsel %vm1586_vm5, %v1582_v44, 0.0 }
 0x216   : > { %v1583_v45 = vmul.f32 0.16666667, %v1575_v36  ;;  %v1600_v52 = vsel %vm1586_vm5, %v1585_v42, 0.0 }
 0x217   : > { %v1595_v61 = vadd.f32 %v1594_v38, %v1593_v40 }
 0x218   : > { %v1596_v46 = vsel %vm1586_vm5, %v1583_v45, 0.0 }
 0x219   : > { %v1597_v49 = vadd.f32 %v1596_v46, %v1595_v61 }
 0x21b   : > { %v1599_v50 = vadd.f32 %v1598_v63, %v1597_v49 }
 0x21d   : > { %v1601_v62 = vadd.f32 %v1600_v52, %v1599_v50 }
 0x21f   : > { %v1602_v1 = vrot.slane %v1601_v62, 4 }
 0x221   : > { %v1603_v0 = vadd.f32 %v1602_v1, %v1601_v62 }
 0x223   : > { %v1604_v3 = vrot.slane %v1603_v0, 2 }
 0x225   : > { %v1605_v53 = vadd.f32 %v1604_v3, %v1603_v0 }
 0x227   : > { %v1606_v54 = vrot.slane %v1605_v53, 1 }
 0x229   : > { %v1607_v15 = vadd.f32 %v1606_v54, %v1605_v53 }
 0x22b   : > { %v1609_v2 = vmul.f32 0.015625, %v1607_v15 }
 0x22d   : > { %v1610_v55 = vpack.c.bf16 %v1609_v2, %v1609_v2  ;;  %1892 = vst.msk [vmem:[%s478_s26] sm:$0x1] %vm1885_vm6, %v1609_v2 }
 0x22f   : > { %2316 = vmatmul.mubr.msk.bf16.vlgmr.msra.gmra.mxu0 %vm1586_vm5, %v1610_v55 }
 0x230   : > { %2332 = vmatpush3.bf16.msra.mxu0 %v2397_v20  ;;  %2335 = vmatprep.mubr.msk.bf16.mxu0 %vm2473_vm4, %v2472_v35 }
 0x231   : > { %2333 = vmatprep.subr.bf16.mxu0 %v2472_v35 }
 0x234   : > { %2334 = vmatpush3.bf16.msra.mxu0 %v2398_v56 }
 0x237   : > { %2336 = vmatmul.mubr.msk.bf16.vlgmr.msra.gmra.mxu0 %vm1586_vm5, %v1610_v55 }
 0x2ef   : > { %v1665_v16 = vpop.f32.mrf.mxu0 }
 0x2f0   : > { %v1666_v25 = vadd.f32 %v1665_v16, %v1615_v4 }
 0x2f1   : > { %v2317_v5 = vpop.f32.mrf.mxu0 }
 0x2f2   : > { %v1675_v58 = vpack.c.bf16 %v1666_v25, %v1666_v25  ;;  %1894 = vst.msk [vmem:[%s481_s28] sm:$0x1] %vm1893_vm7, %v1666_v25  ;;  %s2409_s28 = scalar_lea.vmem %s1922_s21, 16 }
 0x2f3   : > { %v1668_v8 = vpop.f32.mrf.mxu0  ;;  %p2410_p11 = scmp.ne.s32.totalorder %s1922_s21, %s2409_s28  ;;  %p2417_p1 = scmp.lt.s32.totalorder %s2415_s17, %s2409_s28 }
 0x2f4   : > { %2328 = vmatmul.mubr.msk.bf16.vlgmr.msra.gmra.mxu1 %vm1708_vm8, %v1675_v58 }
 0x2f5   : > { %v2318_v47 = vpop.f32.mrf.mxu0  ;;  %2340 = vmatpush3.bf16.msra.mxu1 %v2403_v57  ;;  %2347 = vmatprep.mubr.msk.bf16.mxu1 %vm2473_vm4, %v2472_v35  ;;  %p2411_p12 = pnand %p2410_p11, %p2588_p5  ;;  %p2418_p2 = por %p2417_p1, %p2416_p0 }
 0x2f6   : > { %2341 = vmatprep.subr.bf16.mxu1 %v2472_v35 }
 0x2f7   : > { %v1798_v59 = vpop.f32.mrf.mxu0  ;;  %p2412_p13 = pneg %p2411_p12 }
 0x2f9   : > { %v2337_v7 = vpop.f32.mrf.mxu0  ;;  %2342 = vmatpush3.bf16.msra.mxu1 %v2404_v17  ;;  %p2419_p3 = pnand %p2418_p2, %p2412_p13 }
 0x2fa   : > { %2343 = vmatprep.subr.bf16.mxu1 %v2472_v35 }
 0x2fb   : > { %v1801_v10 = vpop.f32.mrf.mxu0 }
 0x2fd   : > { %v2338_v12 = vpop.f32.mrf.mxu0  ;;  %2344 = vmatpush3.bf16.msra.mxu1 %v2405_v9 }
 0x2fe   : > { %2345 = vmatprep.subr.bf16.mxu1 %v2472_v35  ;;  %v1816_v35 = vld [vmem:[%s3000_s11] sm:$0x1] }
 0x301   : > { %2346 = vmatpush3.bf16.msra.mxu1 %v2406_v21 }
 0x3b4   : > { %v1746_v29 = vpop.f32.mrf.mxu1 }
 0x3b5   : > { %v1799_v31 = vadd.f32 %v1798_v59, %v1746_v29 }
 0x3b6   : > { %v2329_v32 = vpop.f32.mrf.mxu1 }
 0x3b7   : > { %v1805_v51 = vadd.f32 %v1804_v30, %v1799_v31 }
 0x3b8   : > { %v1749_v39 = vpop.f32.mrf.mxu1 }
 0x3b9   : > { %v1806_v14 = vmax.f32 %v1805_v51, 0.0 }
 0x3ba   : > { %v2330_v18 = vpop.f32.mrf.mxu1 }
 0x3bb   : > { %v1807_v22 = vpack.c.bf16 %v1806_v14, %v1806_v14 }
 0x3bd   : > { %2348 = vmatmul.mubr.msk.bf16.vlgmr.msra.gmra.mxu1 %vm1708_vm8, %v1807_v22 }
 0x47d   : > { %v1878_v11 = vpop.f32.mrf.mxu1 }
 0x47e   : > { %v1879_v19 = vadd.f32 %v1878_v11, %v1816_v35 }
 0x47f   : > { %v2349_v23 = vpop.f32.mrf.mxu1 }
 0x480   : > { %v1884_v13 = vmul.f32 %v1879_v19, %v1879_v19 }
 0x481   : > { %v1881_v24 = vpop.f32.mrf.mxu1 }
 0x482   : > { %v1886_v60 = vsel %vm1885_vm6, %v1884_v13, 0.0 }
 0x483   : > { %v2350_v26 = vpop.f32.mrf.mxu1  ;;  %1887 = vadd.xlane.f32.xlu0 %v1886_v60 }
 0x50c   : > { %v1888_v27 = vpop.xlane.xlu0 %1887 }
 0x50d   : > { %v1889_v37 = vmax.f32 %v1888_v27, 1e-24 }
 0x50f   : > { %2407 = vrsqrt.f32 %v1889_v37 }
 0x51c   : > { %v2408_v41 = vpop.eup %2407 }
 0x51d   : > { %v1891_v28 = vmul.f32 %v2408_v41, %v1879_v19 }
 0x51f   : > { %1895 = vst.msk [vmem:[%s470_s0] sm:$0x1] %vm1885_vm6, %v1891_v28 }
 0x520   : > { %2422 = shalt.err (!%p2419_p3)
}
 0x521   : > { %s2423_s15 = scalar_lea.hbm %s1919_s22, 16  ;;  %s2427_s0 = scalar_lea.hbm %s3003_s14, 32 }
 0x522   : > { %p2424_p4 = scmp.ne.s32.totalorder %s1919_s22, %s2423_s15  ;;  %p2428_p9 = scmp.lt.s32.totalorder %s1919_s22, %s3003_s14 }
 0x523   : > { %p2429_p10 = scmp.lt.s32.totalorder %s2427_s0, %s2423_s15 }
 0x524   : > { %p2425_p7 = pnand %p2424_p4, %p2588_p5 }
 0x525   : > { %p2430_p11 = por %p2429_p10, %p2428_p9 }
 0x526   : > { %p2426_p8 = pneg %p2425_p7 }
 0x528   : > { %p2431_p12 = pnand %p2430_p11, %p2426_p8 }
 0x52a   : > { %2434 = shalt.err (!%p2431_p12)
}
 0x52b   : > { %2352 = dma.vmem_to_hbm [thread:$0]  (%p2588_p5), %s1922_s21, 16, %s1919_s22, %s1903_s27  }
 0x52c PF: > { %p2358_p13 = scmp.ge.s32.totalorder %s2469_s16, 2  ;;  %s1945_s1 = sand.u32 1, %s2457_s29  }
 0x52d   : > { %s1946_s28 = scalar_lea.sflag [#allocation3], %s1945_s1 }
 0x52e   : > { %p2355_p0 = pnand %p2358_p13, %p2592_p6 }
 0x530   : > { %p2356_p1 = pneg %p2355_p0 }
 0x532   : > { %2452 = dma.done.wait (%p2356_p1), %s1946_s28, 16  }
 0x533   : > { %2454 = vsyncadd (%p2356_p1), %s1946_s28, 4294967280  ;;  %s3019_s2 = sld [smem:[#allocation5_spill]]  ;;  %p25_p2 = scmp.ge.s32.totalorder %s2575_s19, 4  }
 0x534   : > { %s3020_s15 = sld [smem:[#allocation6_spill]]  ;;  %s3021_s29 = smov %s2461_s30 }
 0x535   : > { %s3023_s16 = smov %s2575_s19  ;;  %27 = sbr.rel (!%p25_p2) target bundleno = 7 (0x7), region = 140 }
 0x539   : > { %s3022_s30 = smov %s3019_s2 }
 0x53a   :  { %1950 = vsyncpa [#allocation3], 1 }
 0x53b   :  { %1952 = vsyncpa [#allocation3 + $0x1], 1 }

</bundles_post_ra>
